<compile_context>
chip_gen: v5e
topology: v5e:2x2
jax: 0.10.0
libtpu: 0.0.40
codegen_flags: <defaults>
</compile_context>

<pallas_src>
import functools

import jax
import jax.numpy as jnp
from jax.experimental import pallas as pl
from jax.experimental.pallas import tpu as pltpu


def _round_up(x, m):
    return (x + m - 1) // m * m


def _pad2d(a, rows, cols):
    r, c = a.shape
    return jnp.pad(a, ((0, rows - r), (0, cols - c)))


# --------------------------------------------------------------------------- #
# Kernel
# --------------------------------------------------------------------------- #
def maskblock_kernel(v_emb_ref, v_hidden_ref,
                     w1_ref, b1_ref, w2_ref, b2_ref,
                     w3_ref, ln_g_ref, ln_b_ref, ln_mask_ref,
                     out_ref, *, out_real):
    x = v_emb_ref[...]          # (tb, in_dim)   real width, compute dtype
    vh = v_hidden_ref[...]      # (tb, hid)      real width, compute dtype

    def mm(a, w_ref):
        # MXU matmul: operands in the weights' dtype (bf16 or f32), f32 accum.
        return jnp.dot(a.astype(w_ref.dtype), w_ref[...],
                       preferred_element_type=jnp.float32)

    # ---- mask_layer: Linear -> ReLU -> Linear (biases stay f32) ------------
    h1 = jnp.maximum(mm(x, w1_ref) + b1_ref[...], 0.0)         # (tb, hr_p)
    v_mask = mm(h1, w2_ref) + b2_ref[...]                      # (tb, hid)

    # ---- element-wise masking (f32 on the VPU) -----------------------------
    masked = v_mask * vh.astype(jnp.float32)                   # (tb, hid)

    # ---- hidden_layer: Linear (no bias) -> LayerNorm -> ReLU ---------------
    h = mm(masked, w3_ref)                                      # (tb, out_p)

    # LayerNorm over the REAL output features.  Padded columns of w3 are zero
    # so padded lanes of `h` are exactly 0; the precomputed lane mask zeroes
    # the centered values so the variance is over the real features only
    # (bit-identical to the iota/where formulation, but no per-step iota).
    inv_n = jnp.float32(1.0 / out_real)
    mean = jnp.sum(h, axis=-1, keepdims=True) * inv_n           # XLU reduce
    centered = (h - mean) * ln_mask_ref[...]
    var = jnp.sum(centered * centered, axis=-1, keepdims=True) * inv_n
    normed = centered * jax.lax.rsqrt(var + 1e-5)               # EUP rsqrt
    v_out = jnp.maximum(normed * ln_g_ref[...] + ln_b_ref[...], 0.0)

    out_ref[...] = v_out.astype(out_ref.dtype)


# --------------------------------------------------------------------------- #
# Parameter preparation (run ONCE, cache the result across calls)
# --------------------------------------------------------------------------- #
def prepare_mask_block_params(params, *, compute_dtype=jnp.bfloat16):
    """Pad / cast the static MaskBlock parameters once.

    params: w1 (in,hr), b1 (1,hr), w2 (hr,hid), b2 (1,hid), w3 (hid,out),
            ln_g (1,out), ln_b (1,out); weights pre-transposed to (in, out).
    Only output dims of the weights are lane-padded; K dims stay real so the
    activation HBM traffic is not inflated.
    """
    in_dim, hr = params["w1"].shape
    hid = params["w2"].shape[1]
    out_dim = params["w3"].shape[1]
    hr_p = _round_up(hr, 128)
    out_p = _round_up(out_dim, 128)

    lane = jnp.arange(out_p)
    return {
        "w1": _pad2d(params["w1"], in_dim, hr_p).astype(compute_dtype),
        "b1": _pad2d(params["b1"], 1, hr_p).astype(jnp.float32),
        "w2": _pad2d(params["w2"], hr_p, hid).astype(compute_dtype),
        "b2": params["b2"].astype(jnp.float32),                     # (1, hid)
        "w3": _pad2d(params["w3"], hid, out_p).astype(compute_dtype),
        "ln_g": _pad2d(params["ln_g"], 1, out_p).astype(jnp.float32),
        "ln_b": _pad2d(params["ln_b"], 1, out_p).astype(jnp.float32),
        "ln_mask": (lane < out_dim).astype(jnp.float32)[None, :],   # (1, out_p)
        "out_dim": int(out_dim),                                    # python int
    }


# --------------------------------------------------------------------------- #
# Wrapper
# --------------------------------------------------------------------------- #
def _choose_batch_tile(B, batch_tile):
    """>=2 tiles when B > 128 (v7x has 2 TCs); tiles a multiple of 128 (MXU-
    and bf16-sublane-friendly); small batches get a single 16-aligned tile."""
    if B <= 128:
        return _round_up(max(B, 16), 16)
    n_tiles = max(2, pl.cdiv(B, batch_tile))
    return min(batch_tile, _round_up(pl.cdiv(B, n_tiles), 128))


def mask_block(v_emb, v_hidden, prepared, *, batch_tile=1024,
               out_dtype=jnp.float32):
    """prepared: output of prepare_mask_block_params (padded/cast weights)."""
    B, in_dim = v_emb.shape
    hid = v_hidden.shape[1]

    w1, b1, w2, b2 = prepared["w1"], prepared["b1"], prepared["w2"], prepared["b2"]
    w3, ln_g, ln_b, ln_mask = (prepared["w3"], prepared["ln_g"],
                               prepared["ln_b"], prepared["ln_mask"])
    out_dim = prepared["out_dim"]
    out_p = ln_g.shape[1]
    hr_p = w1.shape[1]
    compute_dtype = w1.dtype

    tb = _choose_batch_tile(B, batch_tile)
    n_tiles = pl.cdiv(B, tb)
    b_p = n_tiles * tb

    # Batch-row padding only; feature axes keep their real width.
    if b_p != B:
        v_emb = jnp.pad(v_emb, ((0, b_p - B), (0, 0)))
        v_hidden = jnp.pad(v_hidden, ((0, b_p - B), (0, 0)))
    v_emb_p = v_emb.astype(compute_dtype)
    v_hid_p = v_hidden.astype(compute_dtype)

    weight_args = (w1, b1, w2, b2, w3, ln_g, ln_b, ln_mask)

    in_specs = [
        pl.BlockSpec((tb, in_dim), lambda i: (i, 0)),   # V_emb tile (real width)
        pl.BlockSpec((tb, hid), lambda i: (i, 0)),      # V_hidden tile (real width)
    ] + [pl.BlockSpec(w.shape, lambda i: (0, 0)) for w in weight_args]  # resident
    out_spec = pl.BlockSpec((tb, out_p), lambda i: (i, 0))              # lane-dense

    # Cost estimate (in sync with actual dtypes / padding).
    out_itemsize = jnp.dtype(out_dtype).itemsize
    flops = 2 * b_p * (in_dim * hr_p + hr_p * hid + hid * out_p)
    bytes_accessed = (v_emb_p.nbytes + v_hid_p.nbytes
                      + sum(w.nbytes for w in weight_args)
                      + b_p * out_p * out_itemsize)
    cost = pl.CostEstimate(flops=flops, transcendentals=b_p,
                           bytes_accessed=bytes_accessed)

    # VMEM budget (3 buffers' worth of activations/output + resident weights);
    # only raise the scoped limit when we would exceed v5e's 16 MiB default.
    act_itemsize = jnp.dtype(compute_dtype).itemsize
    per_step = tb * ((in_dim + hid) * act_itemsize + out_p * out_itemsize)
    vmem_needed = 3 * per_step + sum(w.nbytes for w in weight_args) + (4 << 20)
    cp_kwargs = dict(dimension_semantics=("parallel",))
    if vmem_needed > (16 << 20):
        cp_kwargs["vmem_limit_bytes"] = int(min(vmem_needed, 48 << 20))

    kernel = functools.partial(maskblock_kernel, out_real=out_dim)

    out_padded = pl.pallas_call(
        kernel,
        out_shape=jax.ShapeDtypeStruct((b_p, out_p), out_dtype),
        grid=(n_tiles,),
        in_specs=in_specs,
        out_specs=out_spec,
        compiler_params=pltpu.CompilerParams(**cp_kwargs),
        cost_estimate=cost,
    )(v_emb_p, v_hid_p, *weight_args)

    return out_padded[:B, :out_dim]


# --------------------------------------------------------------------------- #
# Synthetic params + plain-JAX reference
# --------------------------------------------------------------------------- #
def make_params(key, input_dim, hidden_dim, output_dim, reduction_ratio=1):
    hr = int(hidden_dim * reduction_ratio)
    k1, k2, k3 = jax.random.split(key, 3)

    def xavier(k, fan_in, fan_out):
        std = (2.0 / (fan_in + fan_out)) ** 0.5
        return std * jax.random.normal(k, (fan_in, fan_out), jnp.float32)

    return {
        "w1": xavier(k1, input_dim, hr),
        "b1": jnp.zeros((1, hr), jnp.float32),
        "w2": xavier(k2, hr, hidden_dim),
        "b2": jnp.zeros((1, hidden_dim), jnp.float32),
        "w3": xavier(k3, hidden_dim, output_dim),
        "ln_g": jnp.ones((1, output_dim), jnp.float32),
        "ln_b": jnp.zeros((1, output_dim), jnp.float32),
    }


def mask_block_ref(v_emb, v_hidden, p):
    h1 = jnp.maximum(v_emb @ p["w1"] + p["b1"], 0.0)
    v_mask = h1 @ p["w2"] + p["b2"]
    masked = v_mask * v_hidden
    h = masked @ p["w3"]
    mean = jnp.mean(h, axis=-1, keepdims=True)
    var = jnp.mean((h - mean) ** 2, axis=-1, keepdims=True)
    normed = (h - mean) / jnp.sqrt(var + 1e-5)
    return jnp.maximum(normed * p["ln_g"] + p["ln_b"], 0.0)


if __name__ == "__main__":
    # Small shapes consistent with MaskBlock(input_dim, hidden_dim, output_dim).
    # batch=384 exercises multi-tile pipelining (2 tiles of 256) + batch padding;
    # feature dims of 32 exercise the real-width activation / padded-weight path.
    batch, input_dim, hidden_dim, output_dim = 384, 32, 32, 32
    reduction_ratio = 1  # dropout_rate = 0 -> no dropout layer

    key = jax.random.PRNGKey(0)
    k_emb, k_hid, k_par = jax.random.split(key, 3)

    v_emb = jax.random.normal(k_emb, (batch, input_dim), jnp.float32)
    v_hidden = jax.random.normal(k_hid, (batch, hidden_dim), jnp.float32)
    params = make_params(k_par, input_dim, hidden_dim, output_dim, reduction_ratio)

    ref = mask_block_ref(v_emb, v_hidden, params)

    # 1) f32 compute path: exact check against the f32 reference.
    prep_f32 = prepare_mask_block_params(params, compute_dtype=jnp.float32)
    out_f32 = jax.block_until_ready(mask_block(v_emb, v_hidden, prep_f32))
    assert out_f32.shape == (batch, output_dim)
    assert jnp.allclose(out_f32, ref, atol=1e-4, rtol=1e-4)

    # 2) production default: bf16 matmul operands / activations, f32 accumulation
    #    and f32 LayerNorm; bf16 output.  Loose tolerance vs the f32 reference.
    prep_bf16 = prepare_mask_block_params(params, compute_dtype=jnp.bfloat16)
    out_bf16 = jax.block_until_ready(
        mask_block(v_emb, v_hidden, prep_bf16, out_dtype=jnp.bfloat16))
    out_bf16 = out_bf16.astype(jnp.float32)
    assert out_bf16.shape == (batch, output_dim)
    assert bool(jnp.all(jnp.isfinite(out_bf16)))
    assert jnp.allclose(out_bf16, ref, atol=1e-1, rtol=1e-1)

    print("KERNEL_OK")
</pallas_src>

<mosaic_0001>
module attributes {stable_mosaic.version = 11 : i64} {
  func.func @maskblock_kernel(%arg0: i32, %arg1: memref<256x32xf32, #tpu.memory_space<vmem>>, %arg2: memref<256x32xf32, #tpu.memory_space<vmem>>, %arg3: memref<32x128xf32, #tpu.memory_space<vmem>>, %arg4: memref<1x128xf32, #tpu.memory_space<vmem>>, %arg5: memref<128x32xf32, #tpu.memory_space<vmem>>, %arg6: memref<1x32xf32, #tpu.memory_space<vmem>>, %arg7: memref<32x128xf32, #tpu.memory_space<vmem>>, %arg8: memref<1x128xf32, #tpu.memory_space<vmem>>, %arg9: memref<1x128xf32, #tpu.memory_space<vmem>>, %arg10: memref<1x128xf32, #tpu.memory_space<vmem>>, %arg11: memref<256x128xf32, #tpu.memory_space<vmem>>) attributes {dimension_semantics = [#tpu.dimension_semantics<parallel>], iteration_bounds = array<i64: 2>, scalar_prefetch = 0 : i64, scratch_operands = 0 : i64, tpu.core_type = #tpu.core_type<tc>, window_params = [{transform_indices = @transform_0, window_bounds = array<i64: 256, 32>}, {transform_indices = @transform_1, window_bounds = array<i64: 256, 32>}, {pipeline_mode = #tpu.pipeline_mode<synchronous>, transform_indices = @transform_2, window_bounds = array<i64: 32, 128>}, {pipeline_mode = #tpu.pipeline_mode<synchronous>, transform_indices = @transform_3, window_bounds = array<i64: 1, 128>}, {pipeline_mode = #tpu.pipeline_mode<synchronous>, transform_indices = @transform_4, window_bounds = array<i64: 128, 32>}, {pipeline_mode = #tpu.pipeline_mode<synchronous>, transform_indices = @transform_5, window_bounds = array<i64: 1, 32>}, {pipeline_mode = #tpu.pipeline_mode<synchronous>, transform_indices = @transform_6, window_bounds = array<i64: 32, 128>}, {pipeline_mode = #tpu.pipeline_mode<synchronous>, transform_indices = @transform_7, window_bounds = array<i64: 1, 128>}, {pipeline_mode = #tpu.pipeline_mode<synchronous>, transform_indices = @transform_8, window_bounds = array<i64: 1, 128>}, {pipeline_mode = #tpu.pipeline_mode<synchronous>, transform_indices = @transform_9, window_bounds = array<i64: 1, 128>}, {transform_indices = @transform_10, window_bounds = array<i64: 256, 128>}]} {
    %c0 = arith.constant 0 : index
    %c0_0 = arith.constant 0 : index
    %0 = vector.load %arg1[%c0, %c0_0] : memref<256x32xf32, #tpu.memory_space<vmem>>, vector<256x32xf32>
    %c0_1 = arith.constant 0 : index
    %c0_2 = arith.constant 0 : index
    %1 = vector.load %arg2[%c0_1, %c0_2] : memref<256x32xf32, #tpu.memory_space<vmem>>, vector<256x32xf32>
    %c0_3 = arith.constant 0 : index
    %c0_4 = arith.constant 0 : index
    %2 = vector.load %arg3[%c0_3, %c0_4] : memref<32x128xf32, #tpu.memory_space<vmem>>, vector<32x128xf32>
    %cst = arith.constant dense<0.000000e+00> : vector<256x128xf32>
    %3 = tpu.matmul %0, %2, %cst {dimension_numbers = #tpu.dot_dimension_numbers<[1], [0], [0], [1], [0, 0, 1, 1], [], []>} : vector<256x32xf32>, vector<32x128xf32>, vector<256x128xf32> -> vector<256x128xf32>
    %c0_5 = arith.constant 0 : index
    %c0_6 = arith.constant 0 : index
    %4 = vector.load %arg4[%c0_5, %c0_6] : memref<1x128xf32, #tpu.memory_space<vmem>>, vector<1x128xf32>
    %5 = vector.broadcast %4 : vector<1x128xf32> to vector<256x128xf32>
    %6 = arith.addf %3, %5 : vector<256x128xf32>
    %cst_7 = arith.constant 0.000000e+00 : f32
    %7 = vector.broadcast %cst_7 : f32 to vector<256x128xf32>
    %8 = arith.maximumf %6, %7 : vector<256x128xf32>
    %c0_8 = arith.constant 0 : index
    %c0_9 = arith.constant 0 : index
    %9 = vector.load %arg5[%c0_8, %c0_9] : memref<128x32xf32, #tpu.memory_space<vmem>>, vector<128x32xf32>
    %cst_10 = arith.constant dense<0.000000e+00> : vector<256x32xf32>
    %10 = tpu.matmul %8, %9, %cst_10 {dimension_numbers = #tpu.dot_dimension_numbers<[1], [0], [0], [1], [0, 0, 1, 1], [], []>} : vector<256x128xf32>, vector<128x32xf32>, vector<256x32xf32> -> vector<256x32xf32>
    %c0_11 = arith.constant 0 : index
    %c0_12 = arith.constant 0 : index
    %11 = vector.load %arg6[%c0_11, %c0_12] : memref<1x32xf32, #tpu.memory_space<vmem>>, vector<1x32xf32>
    %12 = vector.broadcast %11 : vector<1x32xf32> to vector<256x32xf32>
    %13 = arith.addf %10, %12 : vector<256x32xf32>
    %14 = arith.mulf %13, %1 : vector<256x32xf32>
    %c0_13 = arith.constant 0 : index
    %c0_14 = arith.constant 0 : index
    %15 = vector.load %arg7[%c0_13, %c0_14] : memref<32x128xf32, #tpu.memory_space<vmem>>, vector<32x128xf32>
    %cst_15 = arith.constant dense<0.000000e+00> : vector<256x128xf32>
    %16 = tpu.matmul %14, %15, %cst_15 {dimension_numbers = #tpu.dot_dimension_numbers<[1], [0], [0], [1], [0, 0, 1, 1], [], []>} : vector<256x32xf32>, vector<32x128xf32>, vector<256x128xf32> -> vector<256x128xf32>
    %cst_16 = arith.constant dense<0.000000e+00> : vector<256xf32>
    %17 = vector.multi_reduction <add>, %16, %cst_16 [1] : vector<256x128xf32> to vector<256xf32>
    %18 = vector.shape_cast %17 : vector<256xf32> to vector<256x1xf32>
    %cst_17 = arith.constant 3.125000e-02 : f32
    %19 = vector.broadcast %cst_17 : f32 to vector<256x1xf32>
    %20 = arith.mulf %18, %19 : vector<256x1xf32>
    %21 = vector.broadcast %20 : vector<256x1xf32> to vector<256x128xf32>
    %22 = arith.subf %16, %21 : vector<256x128xf32>
    %c0_18 = arith.constant 0 : index
    %c0_19 = arith.constant 0 : index
    %23 = vector.load %arg10[%c0_18, %c0_19] : memref<1x128xf32, #tpu.memory_space<vmem>>, vector<1x128xf32>
    %24 = vector.broadcast %23 : vector<1x128xf32> to vector<256x128xf32>
    %25 = arith.mulf %22, %24 : vector<256x128xf32>
    %26 = arith.mulf %25, %25 : vector<256x128xf32>
    %cst_20 = arith.constant dense<0.000000e+00> : vector<256xf32>
    %27 = vector.multi_reduction <add>, %26, %cst_20 [1] : vector<256x128xf32> to vector<256xf32>
    %28 = vector.shape_cast %27 : vector<256xf32> to vector<256x1xf32>
    %cst_21 = arith.constant 3.125000e-02 : f32
    %29 = vector.broadcast %cst_21 : f32 to vector<256x1xf32>
    %30 = arith.mulf %28, %29 : vector<256x1xf32>
    %cst_22 = arith.constant 9.99999974E-6 : f32
    %31 = vector.broadcast %cst_22 : f32 to vector<256x1xf32>
    %32 = arith.addf %30, %31 : vector<256x1xf32>
    %33 = math.rsqrt %32 : vector<256x1xf32>
    %34 = vector.broadcast %33 : vector<256x1xf32> to vector<256x128xf32>
    %35 = arith.mulf %25, %34 : vector<256x128xf32>
    %c0_23 = arith.constant 0 : index
    %c0_24 = arith.constant 0 : index
    %36 = vector.load %arg8[%c0_23, %c0_24] : memref<1x128xf32, #tpu.memory_space<vmem>>, vector<1x128xf32>
    %37 = vector.broadcast %36 : vector<1x128xf32> to vector<256x128xf32>
    %38 = arith.mulf %35, %37 : vector<256x128xf32>
    %c0_25 = arith.constant 0 : index
    %c0_26 = arith.constant 0 : index
    %39 = vector.load %arg9[%c0_25, %c0_26] : memref<1x128xf32, #tpu.memory_space<vmem>>, vector<1x128xf32>
    %40 = vector.broadcast %39 : vector<1x128xf32> to vector<256x128xf32>
    %41 = arith.addf %38, %40 : vector<256x128xf32>
    %cst_27 = arith.constant 0.000000e+00 : f32
    %42 = vector.broadcast %cst_27 : f32 to vector<256x128xf32>
    %43 = arith.maximumf %41, %42 : vector<256x128xf32>
    %c0_28 = arith.constant 0 : index
    %c0_29 = arith.constant 0 : index
    %44 = vector.load %arg11[%c0_28, %c0_29] : memref<256x128xf32, #tpu.memory_space<vmem>>, vector<256x128xf32>
    tpu.vector_store %arg11[%c0_28, %c0_29], %43 {strides = array<i32>} : memref<256x128xf32, #tpu.memory_space<vmem>>, vector<256x128xf32>,
    return
  }
  func.func @transform_0(%arg0: i32) -> (i32, i32) {
    %c0_i32 = arith.constant 0 : i32
    %c0_i32_0 = arith.constant 0 : i32
    return %arg0, %c0_i32 : i32, i32
  }
  func.func @transform_1(%arg0: i32) -> (i32, i32) {
    %c0_i32 = arith.constant 0 : i32
    %c0_i32_0 = arith.constant 0 : i32
    return %arg0, %c0_i32 : i32, i32
  }
  func.func @transform_2(%arg0: i32) -> (i32, i32) {
    %c0_i32 = arith.constant 0 : i32
    %c0_i32_0 = arith.constant 0 : i32
    %c0_i32_1 = arith.constant 0 : i32
    return %c0_i32, %c0_i32_0 : i32, i32
  }
  func.func @transform_3(%arg0: i32) -> (i32, i32) {
    %c0_i32 = arith.constant 0 : i32
    %c0_i32_0 = arith.constant 0 : i32
    %c0_i32_1 = arith.constant 0 : i32
    return %c0_i32, %c0_i32_0 : i32, i32
  }
  func.func @transform_4(%arg0: i32) -> (i32, i32) {
    %c0_i32 = arith.constant 0 : i32
    %c0_i32_0 = arith.constant 0 : i32
    %c0_i32_1 = arith.constant 0 : i32
    return %c0_i32, %c0_i32_0 : i32, i32
  }
  func.func @transform_5(%arg0: i32) -> (i32, i32) {
    %c0_i32 = arith.constant 0 : i32
    %c0_i32_0 = arith.constant 0 : i32
    %c0_i32_1 = arith.constant 0 : i32
    return %c0_i32, %c0_i32_0 : i32, i32
  }
  func.func @transform_6(%arg0: i32) -> (i32, i32) {
    %c0_i32 = arith.constant 0 : i32
    %c0_i32_0 = arith.constant 0 : i32
    %c0_i32_1 = arith.constant 0 : i32
    return %c0_i32, %c0_i32_0 : i32, i32
  }
  func.func @transform_7(%arg0: i32) -> (i32, i32) {
    %c0_i32 = arith.constant 0 : i32
    %c0_i32_0 = arith.constant 0 : i32
    %c0_i32_1 = arith.constant 0 : i32
    return %c0_i32, %c0_i32_0 : i32, i32
  }
  func.func @transform_8(%arg0: i32) -> (i32, i32) {
    %c0_i32 = arith.constant 0 : i32
    %c0_i32_0 = arith.constant 0 : i32
    %c0_i32_1 = arith.constant 0 : i32
    return %c0_i32, %c0_i32_0 : i32, i32
  }
  func.func @transform_9(%arg0: i32) -> (i32, i32) {
    %c0_i32 = arith.constant 0 : i32
    %c0_i32_0 = arith.constant 0 : i32
    %c0_i32_1 = arith.constant 0 : i32
    return %c0_i32, %c0_i32_0 : i32, i32
  }
  func.func @transform_10(%arg0: i32) -> (i32, i32) {
    %c0_i32 = arith.constant 0 : i32
    %c0_i32_0 = arith.constant 0 : i32
    return %arg0, %c0_i32 : i32, i32
  }
}

</mosaic_0001>

<bundles_post_ra>
// kernel: tpu_custom_call.1
= control target key start
LH: loop header
LB: loop body
LE: loop exit
PB: predicated region body
PF: predicated region fallthrough
CT: control target
= control target key end

     0   :  { %15 = vsyncpa [#allocation3], 0  ;;  %s3138_s0 = inlined_call_operand.vmem [shape: f32[512,32], index: 0, kind: input, shape index: {}]   ;;  %s3139_s1 = inlined_call_operand.vmem [shape: f32[512,32], index: 1, kind: input, shape index: {}]   ;;  %s3140_s2 = inlined_call_operand.vmem [shape: f32[32,128], index: 2, kind: input, shape index: {}]   ;;  %s3141_s3 = inlined_call_operand.vmem [shape: f32[1,128], index: 3, kind: input, shape index: {}]   ;;  %s3142_s4 = inlined_call_operand.vmem [shape: f32[128,32], index: 4, kind: input, shape index: {}]   ;;  %s3143_s5 = inlined_call_operand.vmem [shape: f32[1,32], index: 5, kind: input, shape index: {}]   ;;  %s3144_s6 = inlined_call_operand.vmem [shape: f32[32,128], index: 6, kind: input, shape index: {}]   ;;  %s3145_s7 = inlined_call_operand.vmem [shape: f32[1,128], index: 7, kind: input, shape index: {}]   ;;  %s3146_s8 = inlined_call_operand.vmem [shape: f32[1,128], index: 8, kind: input, shape index: {}]   ;;  %s3147_s9 = inlined_call_operand.vmem [shape: f32[1,128], index: 9, kind: input, shape index: {}]   ;;  %s3148_s10 = inlined_call_operand.hbm [shape: f32[512,128], index: 10, kind: output, shape index: {}]  }
   0x1   :  { %17 = vsyncpa [#allocation3 + $0x1], 0  ;;  %s2313_s13 = smov 0   ;;  %s2315_s14 = smov 0  }
   0x2   :  { %s2317_s15 = smov 0   ;;  %s2319_s16 = smov 0  }
   0x3 LB: > { %s2334_s17 = sadd.s32 4294967295, %s2254_s16   ;;  %s1977_s18 = sadd.s32 4294967294, %s2254_s16   ;;  %s2254_s16 = sphi %s2319_s16, %s3154_s16   ;;  %s2250_s15 = sphi %s2317_s15, %s3153_s15   ;;  %s2246_s14 = sphi %s2315_s14, %s3152_s14   ;;  %s2242_s13 = sphi %s2313_s13, %s3151_s13  }
   0x4   : > { %s2338_s19 = sadd.s32 1, %s2254_s16   ;;  %s250_s20 = sadd.s32 1, %s2250_s15 }
   0x5   : > { %s247_s21 = ssub.s32 %s2254_s16, %s2338_s19  ;;  %p260_p0 = scmp.ne.s32.totalorder %s2250_s15, %s2246_s14 }
   0x6   : > { %p248_p1 = scmp.eq.s32.totalorder %s247_s21, 0  ;;  %p261_p2 = scmp.eq.s32.totalorder %s2334_s17, 1 }
   0x7   : > { %p266_p3 = scmp.ne.s32.totalorder %s2246_s14, %s2242_s13  ;;  %p267_p4 = scmp.eq.s32.totalorder %s1977_s18, 1 }
   0x8   : > { %s2349_s22 = scalar_select %p248_p1, %s2250_s15, %s250_s20  }
   0x9   : > { %p2351_p5 = por %p261_p2, %p260_p0  ;;  %p2355_p6 = por %p267_p4, %p266_p3 }
   0xa   : > { %p1980_p7 = scmp.ge.s32.totalorder %s2254_s16, 1  ;;  %p327_p8 = scmp.lt.s32.totalorder %s2254_s16, 3 }
   0xc   : > { %p328_p9 = pnand %p1980_p7, %p327_p8 }
   0xd   : > { %s1982_s29 = sshll.u32 (!%p328_p9), %s2334_s17, 5  ;;  %s367_s25 = sand.u32 (!%p328_p9), 1, %s2246_s14  }
   0xe   : > { %331 = sbr.rel (%p328_p9) target bundleno = 947 (0x3b3), region = 60  ;;  %p371_p10 = scmp.lt.s32.totalorder (!%p328_p9), %s1982_s29, 63 }
   0xf   : > { %s1981_s30 = sshll.u32 (!%p328_p9), %s367_s25, 8  ;;  %s2212_s21 = scalar_lea.hbm (!%p328_p9), %s3148_s10, 512 }
  0x13   : > { %v450_v0 = vld [vmem:[%s3140_s2 + $0x18] sm:$0xff]  ;;  %v449_v1 = vld [vmem:[%s3140_s2 + $0x10] sm:$0xff]  ;;  %v448_v2 = vld [vmem:[%s3140_s2 + $0x8] sm:$0xff]  ;;  %s3156_s29 = smov (!%p371_p10, %s1982_s29), 63  ;;  %vm455_vm0 = vcmask 261120  }
  0x14   : > { %564 = vmatpush.msra.mxu0 %v450_v0  ;;  %2056 = vmatpush.msra.mxu3 %v450_v0  ;;  %v447_v3 = vld [vmem:[%s3140_s2] sm:$0xff]  ;;  %s1983_s20 = sshll.u32 %s3156_s29, 3  ;;  %v712_v13 = vld [vmem:[%s3142_s4 + $0x78] sm:$0xff]  ;;  %v711_v14 = vld [vmem:[%s3142_s4 + $0x70] sm:$0xff] }
  0x15   : > { %s2382_s26 = scalar_lea.vmem %s3138_s0, %s1983_s20  ;;  %717 = vmatpush.msra.mxu1 %v712_v13  ;;  %v710_v15 = vld [vmem:[%s3142_s4 + $0x68] sm:$0xff]  ;;  %v709_v17 = vld [vmem:[%s3142_s4 + $0x60] sm:$0xff]  ;;  %v708_v18 = vld [vmem:[%s3142_s4 + $0x58] sm:$0xff]  ;;  %s2534_s11 = scalar_lea.vmem %s3139_s1, %s1983_s20 }
  0x16   : > { %565 = vmatpush.msra.mxu0 %v449_v1  ;;  %2057 = vmatpush.msra.mxu3 %v449_v1  ;;  %v383_v4 = vld [vmem:[%s2382_s26] sm:$0xff]  ;;  %v384_v5 = vld [vmem:[%s2382_s26 + $0x8] sm:$0xff]  ;;  %v385_v6 = vld [vmem:[%s2382_s26 + $0x10] sm:$0xff] }
  0x17   : > { %v386_v7 = vld [vmem:[%s2382_s26 + $0x18] sm:$0xff]  ;;  %v387_v8 = vld [vmem:[%s2382_s26 + $0x20] sm:$0xff]  ;;  %v388_v9 = vld [vmem:[%s2382_s26 + $0x28] sm:$0xff]  ;;  %718 = vmatpush.msra.mxu1 %v711_v14 }
  0x18   : > { %566 = vmatpush.msra.mxu0 %v448_v2  ;;  %2058 = vmatpush.msra.mxu3 %v448_v2  ;;  %v389_v10 = vld [vmem:[%s2382_s26 + $0x30] sm:$0xff]  ;;  %v390_v11 = vld [vmem:[%s2382_s26 + $0x38] sm:$0xff]  ;;  %v391_v12 = vld [vmem:[%s2382_s26 + $0x40] sm:$0xff] }
  0x19   : > { %v392_v16 = vld [vmem:[%s2382_s26 + $0x48] sm:$0xff]  ;;  %719 = vmatpush.msra.mxu1 %v710_v15  ;;  %v707_v19 = vld [vmem:[%s3142_s4 + $0x50] sm:$0xff]  ;;  %v705_v22 = vld [vmem:[%s3142_s4 + $0x40] sm:$0xff] }
  0x1a   : > { %567 = vmatpush.msra.mxu0 %v447_v3  ;;  %2059 = vmatpush.msra.mxu3 %v447_v3  ;;  %v706_v20 = vld [vmem:[%s3142_s4 + $0x48] sm:$0xff]  ;;  %v393_v21 = vld [vmem:[%s2382_s26 + $0x50] sm:$0xff]  ;;  %v704_v23 = vld [vmem:[%s3142_s4 + $0x38] sm:$0xff] }
  0x1b   : > { %1986 = vmatmul.msk.f32.vlgmr.msra.gmra.mxu0 %vm455_vm0, %v383_v4  ;;  %720 = vmatpush.msra.mxu1 %v709_v17  ;;  %v703_v24 = vld [vmem:[%s3142_s4 + $0x30] sm:$0xff]  ;;  %v702_v25 = vld [vmem:[%s3142_s4 + $0x28] sm:$0xff]  ;;  %v394_v26 = vld [vmem:[%s2382_s26 + $0x58] sm:$0xff] }
  0x1c   : > { %2060 = vmatpush.msrb.mxu3 %v712_v13  ;;  %v701_v27 = vld [vmem:[%s3142_s4 + $0x20] sm:$0xff]  ;;  %v700_v28 = vld [vmem:[%s3142_s4 + $0x18] sm:$0xff]  ;;  %v699_v29 = vld [vmem:[%s3142_s4 + $0x10] sm:$0xff] }
  0x1d   : > { %721 = vmatpush.msra.mxu1 %v708_v18  ;;  %v395_v30 = vld [vmem:[%s2382_s26 + $0x60] sm:$0xff]  ;;  %v698_v31 = vld [vmem:[%s3142_s4 + $0x8] sm:$0xff]  ;;  %v397_v34 = vld [vmem:[%s2382_s26 + $0x70] sm:$0xff] }
  0x1e   : > { %2061 = vmatpush.msrb.mxu3 %v711_v14  ;;  %v697_v32 = vld [vmem:[%s3142_s4] sm:$0xff]  ;;  %v396_v33 = vld [vmem:[%s2382_s26 + $0x68] sm:$0xff]  ;;  %v398_v35 = vld [vmem:[%s2382_s26 + $0x78] sm:$0xff] }
  0x1f   : > { %722 = vmatpush.msra.mxu1 %v707_v19  ;;  %v2467_v36 = vld [vmem:[%s3141_s3] ss:$0 sm:$0xff]  ;;  %v400_v42 = vld [vmem:[%s2382_s26 + $0x88] sm:$0xff]  ;;  %v401_v46 = vld [vmem:[%s2382_s26 + $0x90] sm:$0xff] }
  0x20   : > { %2062 = vmatpush.msrb.mxu3 %v710_v15  ;;  %v399_v38 = vld [vmem:[%s2382_s26 + $0x80] sm:$0xff]  ;;  %v402_v50 = vld [vmem:[%s2382_s26 + $0x98] sm:$0xff]  ;;  %v408_v57 = vld [vmem:[%s2382_s26 + $0xc8] sm:$0xff] }
  0x21   : > { %723 = vmatpush.msra.mxu1 %v706_v20  ;;  %v403_v54 = vld [vmem:[%s2382_s26 + $0xa0] sm:$0xff]  ;;  %2011 = vmatmul.msk.f32.vlgmr.msra.gmra.mxu3 %vm455_vm0, %v408_v57  ;;  %v404_v59 = vld [vmem:[%s2382_s26 + $0xa8] sm:$0xff]  ;;  %v409_v62 = vld [vmem:[%s2382_s26 + $0xd0] sm:$0xff] }
  0x22   : > { %2063 = vmatpush.msrb.mxu3 %v709_v17  ;;  %v405_v0 = vld [vmem:[%s2382_s26 + $0xb0] sm:$0xff]  ;;  %v410_v3 = vld [vmem:[%s2382_s26 + $0xd8] sm:$0xff]  ;;  %v412_v13 = vld [vmem:[%s2382_s26 + $0xe8] sm:$0xff] }
  0x23   : > { %1987 = vmatmul.msk.f32.gmra.mxu0 %vm455_vm0, %v384_v5  ;;  %724 = vmatpush.msra.mxu1 %v705_v22  ;;  %v406_v5 = vld [vmem:[%s2382_s26 + $0xb8] sm:$0xff]  ;;  %v413_v17 = vld [vmem:[%s2382_s26 + $0xf0] sm:$0xff] }
  0x24   : > { %2064 = vmatpush.msrb.mxu3 %v708_v18 }
  0x25   : > { %725 = vmatpush.msra.mxu1 %v704_v23 }
  0x26   : > { %2065 = vmatpush.msrb.mxu3 %v707_v19 }
  0x27   : > { %726 = vmatpush.msra.mxu1 %v703_v24 }
  0x28   : > { %2066 = vmatpush.msrb.mxu3 %v706_v20 }
  0x29   : > { %727 = vmatpush.msra.mxu1 %v702_v25  ;;  %2012 = vmatmul.msk.f32.gmra.mxu3 %vm455_vm0, %v409_v62 }
  0x2a   : > { %2067 = vmatpush.msrb.mxu3 %v705_v22 }
  0x2b   : > { %1988 = vmatmul.msk.f32.gmra.mxu0 %vm455_vm0, %v385_v6  ;;  %728 = vmatpush.msra.mxu1 %v701_v27 }
  0x2c   : > { %2068 = vmatpush.msrb.mxu3 %v704_v23 }
  0x2d   : > { %729 = vmatpush.msra.mxu1 %v700_v28 }
  0x2e   : > { %2069 = vmatpush.msrb.mxu3 %v703_v24 }
  0x2f   : > { %730 = vmatpush.msra.mxu1 %v699_v29 }
  0x30   : > { %2070 = vmatpush.msrb.mxu3 %v702_v25  ;;  %v865_v25 = vld [vmem:[%s3144_s6 + $0x18] sm:$0xff] }
  0x31   : > { %731 = vmatpush.msra.mxu1 %v698_v31  ;;  %2013 = vmatmul.msk.f32.gmra.mxu3 %vm455_vm0, %v410_v3 }
  0x32   : > { %2071 = vmatpush.msrb.mxu3 %v701_v27  ;;  %974 = vmatpush.msra.mxu2 %v865_v25 }
  0x33   : > { %1989 = vmatmul.msk.f32.gmra.mxu0 %vm455_vm0, %v386_v7  ;;  %732 = vmatpush.msra.mxu1 %v697_v32 }
  0x34   : > { %2072 = vmatpush.msrb.mxu3 %v700_v28  ;;  %v864_v28 = vld [vmem:[%s3144_s6 + $0x10] sm:$0xff] }
  0x35   : > { %975 = vmatpush.msra.mxu2 %v864_v28 }
  0x36   : > { %2073 = vmatpush.msrb.mxu3 %v699_v29 }
  0x38   : > { %2074 = vmatpush.msrb.mxu3 %v698_v31  ;;  %v862_v31 = vld [vmem:[%s3144_s6] sm:$0xff] }
  0x3a   : > { %2075 = vmatpush.msrb.mxu3 %v697_v32 }
  0x3b   : > { %1990 = vmatmul.msk.f32.gmra.mxu0 %vm455_vm0, %v387_v8  ;;  %v411_v8 = vld [vmem:[%s2382_s26 + $0xe0] sm:$0xff] }
  0x3c   : > { %2014 = vmatmul.msk.f32.gmra.mxu3 %vm455_vm0, %v411_v8 }
  0x3d   : > { %2076 = vmatpush.msra.mxu3 %v865_v25 }
  0x3f   : > { %2077 = vmatpush.msra.mxu3 %v864_v28 }
  0x43   : > { %1991 = vmatmul.msk.f32.gmra.mxu0 %vm455_vm0, %v388_v9 }
  0x44   : > { %2015 = vmatmul.msk.f32.gmra.mxu3 %vm455_vm0, %v412_v13 }
  0x4b   : > { %1992 = vmatmul.msk.f32.gmra.mxu0 %vm455_vm0, %v389_v10  ;;  %v407_v10 = vld [vmem:[%s2382_s26 + $0xc0] sm:$0xff] }
  0x4c   : > { %2016 = vmatmul.msk.f32.gmra.mxu3 %vm455_vm0, %v413_v17 }
  0x53   : > { %1993 = vmatmul.msk.f32.gmra.mxu0 %vm455_vm0, %v390_v11 }
  0x5b   : > { %1994 = vmatmul.msk.f32.gmra.mxu0 %vm455_vm0, %v391_v12 }
  0x63   : > { %1995 = vmatmul.msk.f32.gmra.mxu0 %vm455_vm0, %v392_v16 }
  0x6b   : > { %1996 = vmatmul.msk.f32.gmra.mxu0 %vm455_vm0, %v393_v21  ;;  %v414_v21 = vld [vmem:[%s2382_s26 + $0xf8] sm:$0xff]  ;;  %s2055_s26 = sshll.u32 %s2334_s17, 8  ;;  %s1888_s17 = scalar_lea.sflag [#allocation3], %s367_s25 }
  0x6c   : > { %2017 = vmatmul.msk.f32.gmra.mxu3 %vm455_vm0, %v414_v21  ;;  %s1899_s28 = scalar_lea.hbm %s3148_s10, %s2055_s26 }
  0x6d   : > { %s1902_s12 = sshll.u32 %s1899_s28, 4  ;;  %s1903_s12 = int_to_ptr.hbm [resolvable:$true] %s1902_s12 }
  0x6e   : > { %s2206_s18 = sshra.s32 %s1903_s12, 4  ;;  %s2207_s18 = int_to_ptr.hbm [resolvable:$true] %s2206_s18 }
  0x6f   : > { %s2208_s29 = scalar_lea.hbm %s2207_s18, 256  ;;  %p2213_p0 = scmp.lt.s32.totalorder %s2207_s18, %s3148_s10 }
  0x70   : > { %p2209_p11 = scmp.ne.s32.totalorder %s2207_s18, %s2208_s29  ;;  %p2214_p1 = scmp.lt.s32.totalorder %s2212_s21, %s2208_s29 }
  0x72   : > { %p2210_p12 = pnand %p2209_p11, %p2351_p5  ;;  %p2215_p2 = por %p2214_p1, %p2213_p0 }
  0x73   : > { %1997 = vmatmul.msk.f32.gmra.mxu0 %vm455_vm0, %v394_v26 }
  0x74   : > { %p2211_p13 = pneg %p2210_p12 }
  0x76   : > { %p2216_p3 = pnand %p2215_p2, %p2211_p13 }
  0x7b   : > { %1998 = vmatmul.msk.f32.gmra.mxu0 %vm455_vm0, %v395_v30  ;;  %v863_v30 = vld [vmem:[%s3144_s6 + $0x8] sm:$0xff] }
  0x7c   : > { %976 = vmatpush.msra.mxu2 %v863_v30  ;;  %2078 = vmatpush.msra.mxu3 %v863_v30 }
  0x7e   : > { %977 = vmatpush.msra.mxu2 %v862_v31  ;;  %2079 = vmatpush.msra.mxu3 %v862_v31  ;;  %v422_v31 = vld [vmem:[%s2534_s11 + $0x38] sm:$0xff] }
  0x83   : > { %1999 = vmatmul.msk.f32.gmra.mxu0 %vm455_vm0, %v396_v33 }
  0x8b   : > { %2000 = vmatmul.msk.f32.gmra.mxu0 %vm455_vm0, %v397_v34 }
  0x93   : > { %2001 = vmatmul.msk.f32.gmra.mxu0 %vm455_vm0, %v398_v35 }
  0x98   : > { %v569_v37 = vpop.f32.mrf.mxu0 }
  0x99   : > { %v570_v39 = vadd.f32 %v2467_v36, %v569_v37 }
  0x9b   : > { %2002 = vmatmul.msk.f32.gmra.mxu0 %vm455_vm0, %v399_v38  ;;  %v665_v40 = vmax.f32 %v570_v39, 0.0 }
  0x9d   : > { %733 = vmatmul.f32.vlgmr.msra.gmra.mxu1 %v665_v40 }
  0xa0   : > { %v572_v41 = vpop.f32.mrf.mxu0 }
  0xa1   : > { %v573_v43 = vadd.f32 %v2467_v36, %v572_v41 }
  0xa3   : > { %v666_v44 = vmax.f32 %v573_v43, 0.0  ;;  %2003 = vmatmul.msk.f32.gmra.mxu0 %vm455_vm0, %v400_v42  ;;  %v2539_v42 = vld [vmem:[%s3143_s5] ss:$0 sm:$0xff] }
  0xa4   : > { %v644_v28 = vpop.f32.mrf.mxu3 }
  0xa5   : > { %736 = vmatmul.f32.gmra.mxu1 %v666_v44 }
  0xa8   : > { %v575_v45 = vpop.f32.mrf.mxu0 }
  0xa9   : > { %v576_v47 = vadd.f32 %v2467_v36, %v575_v45  ;;  %v415_v45 = vld [vmem:[%s2534_s11] sm:$0xff] }
  0xab   : > { %v667_v48 = vmax.f32 %v576_v47, 0.0  ;;  %2004 = vmatmul.msk.f32.gmra.mxu0 %vm455_vm0, %v401_v46 }
  0xad   : > { %739 = vmatmul.f32.gmra.mxu1 %v667_v48 }
  0xb0   : > { %v578_v49 = vpop.f32.mrf.mxu0 }
  0xb1   : > { %v579_v51 = vadd.f32 %v2467_v36, %v578_v49 }
  0xb3   : > { %v668_v52 = vmax.f32 %v579_v51, 0.0  ;;  %2005 = vmatmul.msk.f32.gmra.mxu0 %vm455_vm0, %v402_v50 }
  0xb5   : > { %742 = vmatmul.f32.gmra.mxu1 %v668_v52  ;;  %v416_v52 = vld [vmem:[%s2534_s11 + $0x8] sm:$0xff] }
  0xb8   : > { %v581_v53 = vpop.f32.mrf.mxu0 }
  0xb9   : > { %v582_v55 = vadd.f32 %v2467_v36, %v581_v53 }
  0xbb   : > { %v669_v56 = vmax.f32 %v582_v55, 0.0  ;;  %2006 = vmatmul.msk.f32.gmra.mxu0 %vm455_vm0, %v403_v54 }
  0xbd   : > { %745 = vmatmul.f32.gmra.mxu1 %v669_v56 }
  0xc0   : > { %v584_v58 = vpop.f32.mrf.mxu0 }
  0xc1   : > { %v585_v60 = vadd.f32 %v2467_v36, %v584_v58 }
  0xc3   : > { %v670_v61 = vmax.f32 %v585_v60, 0.0  ;;  %2007 = vmatmul.msk.f32.gmra.mxu0 %vm455_vm0, %v404_v59  ;;  %v417_v59 = vld [vmem:[%s2534_s11 + $0x10] sm:$0xff] }
  0xc5   : > { %748 = vmatmul.f32.gmra.mxu1 %v670_v61 }
  0xc8   : > { %v587_v63 = vpop.f32.mrf.mxu0 }
  0xc9   : > { %v588_v1 = vadd.f32 %v2467_v36, %v587_v63 }
  0xcb   : > { %v671_v2 = vmax.f32 %v588_v1, 0.0  ;;  %2008 = vmatmul.msk.f32.gmra.mxu0 %vm455_vm0, %v405_v0 }
  0xcd   : > { %751 = vmatmul.f32.gmra.mxu1 %v671_v2  ;;  %v418_v2 = vld [vmem:[%s2534_s11 + $0x18] sm:$0xff] }
  0xd0   : > { %v590_v4 = vpop.f32.mrf.mxu0 }
  0xd1   : > { %v591_v6 = vadd.f32 %v2467_v36, %v590_v4 }
  0xd3   : > { %v672_v7 = vmax.f32 %v591_v6, 0.0  ;;  %2009 = vmatmul.msk.f32.gmra.mxu0 %vm455_vm0, %v406_v5 }
  0xd5   : > { %754 = vmatmul.f32.gmra.mxu1 %v672_v7 }
  0xd8   : > { %v593_v9 = vpop.f32.mrf.mxu0 }
  0xd9   : > { %v594_v11 = vadd.f32 %v2467_v36, %v593_v9  ;;  %v419_v9 = vld [vmem:[%s2534_s11 + $0x20] sm:$0xff] }
  0xdb   : > { %v673_v12 = vmax.f32 %v594_v11, 0.0  ;;  %2010 = vmatmul.msk.f32.gmra.mxu0 %vm455_vm0, %v407_v10 }
  0xdd   : > { %757 = vmatmul.f32.gmra.mxu1 %v673_v12 }
  0xe0   : > { %v596_v14 = vpop.f32.mrf.mxu0 }
  0xe1   : > { %v597_v15 = vadd.f32 %v2467_v36, %v596_v14 }
  0xe3   : > { %v674_v16 = vmax.f32 %v597_v15, 0.0 }
  0xe5   : > { %760 = vmatmul.f32.gmra.mxu1 %v674_v16  ;;  %v420_v16 = vld [vmem:[%s2534_s11 + $0x28] sm:$0xff] }
  0xe8   : > { %v599_v18 = vpop.f32.mrf.mxu0 }
  0xe9   : > { %v600_v19 = vadd.f32 %v2467_v36, %v599_v18 }
  0xeb   : > { %v675_v20 = vmax.f32 %v600_v19, 0.0 }
  0xed   : > { %763 = vmatmul.f32.gmra.mxu1 %v675_v20 }
  0xf0   : > { %v602_v22 = vpop.f32.mrf.mxu0 }
  0xf1   : > { %v603_v23 = vadd.f32 %v2467_v36, %v602_v22 }
  0xf3   : > { %v676_v24 = vmax.f32 %v603_v23, 0.0  ;;  %v421_v23 = vld [vmem:[%s2534_s11 + $0x30] sm:$0xff] }
  0xf5   : > { %766 = vmatmul.f32.gmra.mxu1 %v676_v24 }
  0xf8   : > { %v605_v26 = vpop.f32.mrf.mxu0 }
  0xf9   : > { %v606_v27 = vadd.f32 %v2467_v36, %v605_v26 }
  0xfb   : > { %v677_v29 = vmax.f32 %v606_v27, 0.0 }
  0xfd   : > { %769 = vmatmul.f32.gmra.mxu1 %v677_v29 }
 0x100   : > { %v608_v32 = vpop.f32.mrf.mxu0 }
 0x101   : > { %v609_v33 = vadd.f32 %v2467_v36, %v608_v32 }
 0x103   : > { %v678_v34 = vmax.f32 %v609_v33, 0.0 }
 0x105   : > { %772 = vmatmul.f32.gmra.mxu1 %v678_v34 }
 0x108   : > { %v611_v35 = vpop.f32.mrf.mxu0 }
 0x109   : > { %v612_v37 = vadd.f32 %v2467_v36, %v611_v35 }
 0x10b   : > { %v679_v38 = vmax.f32 %v612_v37, 0.0 }
 0x10d   : > { %775 = vmatmul.f32.gmra.mxu1 %v679_v38  ;;  %v647_v38 = vpop.f32.mrf.mxu3 }
 0x110   : > { %v614_v39 = vpop.f32.mrf.mxu0 }
 0x111   : > { %v615_v40 = vadd.f32 %v2467_v36, %v614_v39 }
 0x113   : > { %v680_v41 = vmax.f32 %v615_v40, 0.0  ;;  %v423_v40 = vld [vmem:[%s2534_s11 + $0x40] sm:$0xff] }
 0x115   : > { %778 = vmatmul.f32.gmra.mxu1 %v680_v41 }
 0x118   : > { %v617_v43 = vpop.f32.mrf.mxu0 }
 0x119   : > { %v618_v44 = vadd.f32 %v2467_v36, %v617_v43 }
 0x11a   : > { %v734_v46 = vpop.f32.mrf.mxu1 }
 0x11b   : > { %v681_v47 = vmax.f32 %v618_v44, 0.0  ;;  %v735_v48 = vadd.f32 %v2539_v42, %v734_v46  ;;  %v645_v46 = vadd.f32 %v2467_v36, %v644_v28 }
 0x11d   : > { %v830_v49 = vmul.f32 %v735_v48, %v415_v45  ;;  %781 = vmatmul.f32.gmra.mxu1 %v681_v47  ;;  %v690_v47 = vmax.f32 %v645_v46, 0.0  ;;  %v424_v48 = vld [vmem:[%s2534_s11 + $0x48] sm:$0xff] }
 0x11f   : > { %2018 = vmatmul.msk.f32.vlgmr.msra.gmra.mxu2 %vm455_vm0, %v830_v49 }
 0x120   : > { %v620_v50 = vpop.f32.mrf.mxu0 }
 0x121   : > { %v621_v51 = vadd.f32 %v2467_v36, %v620_v50  ;;  %v650_v50 = vpop.f32.mrf.mxu3 }
 0x122   : > { %v737_v53 = vpop.f32.mrf.mxu1 }
 0x123   : > { %v682_v54 = vmax.f32 %v621_v51, 0.0  ;;  %v738_v55 = vadd.f32 %v2539_v42, %v737_v53  ;;  %v648_v53 = vadd.f32 %v2467_v36, %v647_v38  ;;  %v433_v38 = vld [vmem:[%s2534_s11 + $0x90] sm:$0xff] }
 0x125   : > { %v831_v56 = vmul.f32 %v738_v55, %v416_v52  ;;  %784 = vmatmul.f32.gmra.mxu1 %v682_v54  ;;  %v691_v54 = vmax.f32 %v648_v53, 0.0  ;;  %v425_v55 = vld [vmem:[%s2534_s11 + $0x50] sm:$0xff] }
 0x127   : > { %2019 = vmatmul.msk.f32.gmra.mxu2 %vm455_vm0, %v831_v56 }
 0x128   : > { %v623_v57 = vpop.f32.mrf.mxu0 }
 0x129   : > { %v624_v58 = vadd.f32 %v2467_v36, %v623_v57 }
 0x12a   : > { %v740_v60 = vpop.f32.mrf.mxu1 }
 0x12b   : > { %v683_v61 = vmax.f32 %v624_v58, 0.0  ;;  %v741_v62 = vadd.f32 %v2539_v42, %v740_v60  ;;  %v653_v58 = vpop.f32.mrf.mxu3  ;;  %v651_v60 = vadd.f32 %v2467_v36, %v650_v50 }
 0x12d   : > { %v832_v63 = vmul.f32 %v741_v62, %v417_v59  ;;  %787 = vmatmul.f32.gmra.mxu1 %v683_v61  ;;  %v692_v61 = vmax.f32 %v651_v60, 0.0  ;;  %v426_v62 = vld [vmem:[%s2534_s11 + $0x58] sm:$0xff]  ;;  %v437_v60 = vld [vmem:[%s2534_s11 + $0xb0] sm:$0xff] }
 0x12f   : > { %2020 = vmatmul.msk.f32.gmra.mxu2 %vm455_vm0, %v832_v63 }
 0x130   : > { %v626_v0 = vpop.f32.mrf.mxu0 }
 0x131   : > { %v627_v1 = vadd.f32 %v2467_v36, %v626_v0 }
 0x132   : > { %v743_v3 = vpop.f32.mrf.mxu1 }
 0x133   : > { %v684_v4 = vmax.f32 %v627_v1, 0.0  ;;  %v744_v5 = vadd.f32 %v2539_v42, %v743_v3  ;;  %v656_v3 = vpop.f32.mrf.mxu3 }
 0x135   : > { %v833_v6 = vmul.f32 %v744_v5, %v418_v2  ;;  %790 = vmatmul.f32.gmra.mxu1 %v684_v4  ;;  %v654_v2 = vadd.f32 %v2467_v36, %v653_v58  ;;  %v427_v5 = vld [vmem:[%s2534_s11 + $0x60] sm:$0xff] }
 0x137   : > { %2021 = vmatmul.msk.f32.gmra.mxu2 %vm455_vm0, %v833_v6  ;;  %v693_v4 = vmax.f32 %v654_v2, 0.0 }
 0x138   : > { %v629_v7 = vpop.f32.mrf.mxu0 }
 0x139   : > { %v630_v8 = vadd.f32 %v2467_v36, %v629_v7 }
 0x13a   : > { %v746_v10 = vpop.f32.mrf.mxu1 }
 0x13b   : > { %v685_v11 = vmax.f32 %v630_v8, 0.0  ;;  %v747_v12 = vadd.f32 %v2539_v42, %v746_v10  ;;  %v659_v10 = vpop.f32.mrf.mxu3 }
 0x13d   : > { %v834_v13 = vmul.f32 %v747_v12, %v419_v9  ;;  %793 = vmatmul.f32.gmra.mxu1 %v685_v11  ;;  %v657_v9 = vadd.f32 %v2467_v36, %v656_v3  ;;  %v428_v12 = vld [vmem:[%s2534_s11 + $0x68] sm:$0xff] }
 0x13f   : > { %2022 = vmatmul.msk.f32.gmra.mxu2 %vm455_vm0, %v834_v13  ;;  %v694_v11 = vmax.f32 %v657_v9, 0.0 }
 0x140   : > { %v632_v14 = vpop.f32.mrf.mxu0 }
 0x141   : > { %v633_v15 = vadd.f32 %v2467_v36, %v632_v14 }
 0x142   : > { %v749_v17 = vpop.f32.mrf.mxu1 }
 0x143   : > { %v686_v18 = vmax.f32 %v633_v15, 0.0  ;;  %v750_v19 = vadd.f32 %v2539_v42, %v749_v17 }
 0x145   : > { %v835_v20 = vmul.f32 %v750_v19, %v420_v16  ;;  %796 = vmatmul.f32.gmra.mxu1 %v686_v18  ;;  %v660_v16 = vadd.f32 %v2467_v36, %v659_v10  ;;  %v429_v18 = vld [vmem:[%s2534_s11 + $0x70] sm:$0xff] }
 0x147   : > { %2023 = vmatmul.msk.f32.gmra.mxu2 %vm455_vm0, %v835_v20  ;;  %v695_v17 = vmax.f32 %v660_v16, 0.0  ;;  %v662_v20 = vpop.f32.mrf.mxu3  ;;  %v441_v16 = vld [vmem:[%s2534_s11 + $0xd0] sm:$0xff] }
 0x148   : > { %v635_v21 = vpop.f32.mrf.mxu0 }
 0x149   : > { %v636_v22 = vadd.f32 %v2467_v36, %v635_v21 }
 0x14a   : > { %v752_v24 = vpop.f32.mrf.mxu1 }
 0x14b   : > { %v687_v25 = vmax.f32 %v636_v22, 0.0  ;;  %v753_v26 = vadd.f32 %v2539_v42, %v752_v24 }
 0x14d   : > { %v836_v27 = vmul.f32 %v753_v26, %v421_v23  ;;  %799 = vmatmul.f32.vlgmr.msrb.gmra.mxu3 %v687_v25  ;;  %v663_v23 = vadd.f32 %v2467_v36, %v662_v20  ;;  %v430_v25 = vld [vmem:[%s2534_s11 + $0x78] sm:$0xff] }
 0x14f   : > { %2024 = vmatmul.msk.f32.gmra.mxu2 %vm455_vm0, %v836_v27  ;;  %v696_v24 = vmax.f32 %v663_v23, 0.0 }
 0x150   : > { %v638_v29 = vpop.f32.mrf.mxu0 }
 0x151   : > { %v639_v30 = vadd.f32 %v2467_v36, %v638_v29  ;;  %v431_v29 = vld [vmem:[%s2534_s11 + $0x80] sm:$0xff] }
 0x152   : > { %v755_v32 = vpop.f32.mrf.mxu1 }
 0x153   : > { %v688_v33 = vmax.f32 %v639_v30, 0.0  ;;  %v756_v34 = vadd.f32 %v2539_v42, %v755_v32 }
 0x155   : > { %v837_v35 = vmul.f32 %v756_v34, %v422_v31  ;;  %802 = vmatmul.f32.gmra.mxu3 %v688_v33 }
 0x157   : > { %2025 = vmatmul.msk.f32.gmra.mxu2 %vm455_vm0, %v837_v35 }
 0x158   : > { %v641_v37 = vpop.f32.mrf.mxu0 }
 0x159   : > { %v642_v39 = vadd.f32 %v2467_v36, %v641_v37  ;;  %v432_v36 = vld [vmem:[%s2534_s11 + $0x88] sm:$0xff] }
 0x15a   : > { %v758_v41 = vpop.f32.mrf.mxu1 }
 0x15b   : > { %v689_v43 = vmax.f32 %v642_v39, 0.0  ;;  %v759_v44 = vadd.f32 %v2539_v42, %v758_v41 }
 0x15d   : > { %v838_v45 = vmul.f32 %v759_v44, %v423_v40  ;;  %805 = vmatmul.f32.gmra.mxu3 %v689_v43  ;;  %v434_v44 = vld [vmem:[%s2534_s11 + $0x98] sm:$0xff] }
 0x15f   : > { %2026 = vmatmul.msk.f32.gmra.mxu2 %vm455_vm0, %v838_v45 }
 0x162   : > { %v761_v49 = vpop.f32.mrf.mxu1 }
 0x163   : > { %v762_v51 = vadd.f32 %v2539_v42, %v761_v49  ;;  %v435_v49 = vld [vmem:[%s2534_s11 + $0xa0] sm:$0xff] }
 0x165   : > { %v839_v52 = vmul.f32 %v762_v51, %v424_v48  ;;  %808 = vmatmul.f32.gmra.mxu3 %v690_v47 }
 0x167   : > { %2027 = vmatmul.msk.f32.gmra.mxu2 %vm455_vm0, %v839_v52 }
 0x16a   : > { %v764_v56 = vpop.f32.mrf.mxu1 }
 0x16b   : > { %v765_v57 = vadd.f32 %v2539_v42, %v764_v56 }
 0x16d   : > { %v840_v59 = vmul.f32 %v765_v57, %v425_v55  ;;  %811 = vmatmul.f32.gmra.mxu3 %v691_v54  ;;  %v436_v54 = vld [vmem:[%s2534_s11 + $0xa8] sm:$0xff] }
 0x16f   : > { %2028 = vmatmul.msk.f32.gmra.mxu2 %vm455_vm0, %v840_v59 }
 0x172   : > { %v767_v63 = vpop.f32.mrf.mxu1 }
 0x173   : > { %v768_v0 = vadd.f32 %v2539_v42, %v767_v63 }
 0x175   : > { %v841_v1 = vmul.f32 %v768_v0, %v426_v62  ;;  %814 = vmatmul.f32.gmra.mxu3 %v692_v61 }
 0x177   : > { %2029 = vmatmul.msk.f32.gmra.mxu2 %vm455_vm0, %v841_v1  ;;  %v438_v1 = vld [vmem:[%s2534_s11 + $0xb8] sm:$0xff] }
 0x17a   : > { %v770_v6 = vpop.f32.mrf.mxu1 }
 0x17b   : > { %v771_v7 = vadd.f32 %v2539_v42, %v770_v6  ;;  %v439_v6 = vld [vmem:[%s2534_s11 + $0xc0] sm:$0xff] }
 0x17d   : > { %v842_v8 = vmul.f32 %v771_v7, %v427_v5  ;;  %817 = vmatmul.f32.gmra.mxu3 %v693_v4 }
 0x17f   : > { %2030 = vmatmul.msk.f32.gmra.mxu2 %vm455_vm0, %v842_v8 }
 0x182   : > { %v773_v13 = vpop.f32.mrf.mxu1 }
 0x183   : > { %v774_v14 = vadd.f32 %v2539_v42, %v773_v13 }
 0x185   : > { %v843_v15 = vmul.f32 %v774_v14, %v428_v12  ;;  %820 = vmatmul.f32.gmra.mxu3 %v694_v11  ;;  %v440_v11 = vld [vmem:[%s2534_s11 + $0xc8] sm:$0xff] }
 0x187   : > { %2031 = vmatmul.msk.f32.gmra.mxu2 %vm455_vm0, %v843_v15 }
 0x18a   : > { %v776_v19 = vpop.f32.mrf.mxu1 }
 0x18b   : > { %v777_v21 = vadd.f32 %v2539_v42, %v776_v19 }
 0x18d   : > { %v844_v22 = vmul.f32 %v777_v21, %v429_v18  ;;  %823 = vmatmul.f32.gmra.mxu3 %v695_v17  ;;  %v442_v21 = vld [vmem:[%s2534_s11 + $0xd8] sm:$0xff] }
 0x18f   : > { %2032 = vmatmul.msk.f32.gmra.mxu2 %vm455_vm0, %v844_v22 }
 0x192   : > { %v779_v26 = vpop.f32.mrf.mxu1 }
 0x193   : > { %v780_v27 = vadd.f32 %v2539_v42, %v779_v26  ;;  %v443_v26 = vld [vmem:[%s2534_s11 + $0xe0] sm:$0xff] }
 0x195   : > { %v845_v28 = vmul.f32 %v780_v27, %v430_v25  ;;  %826 = vmatmul.f32.gmra.mxu3 %v696_v24 }
 0x197   : > { %2033 = vmatmul.msk.f32.gmra.mxu2 %vm455_vm0, %v845_v28 }
 0x19a   : > { %v782_v30 = vpop.f32.mrf.mxu1 }
 0x19b   : > { %v783_v31 = vadd.f32 %v2539_v42, %v782_v30 }
 0x19d   : > { %v846_v32 = vmul.f32 %v783_v31, %v431_v29  ;;  %v444_v31 = vld [vmem:[%s2534_s11 + $0xe8] sm:$0xff] }
 0x19f   : > { %2034 = vmatmul.msk.f32.gmra.mxu2 %vm455_vm0, %v846_v32 }
 0x1a2   : > { %v785_v33 = vpop.f32.mrf.mxu1  ;;  %v2609_v34 = vpop.f32.mrf.mxu2 }
 0x1a3   : > { %v786_v35 = vadd.f32 %v2539_v42, %v785_v33  ;;  %1075 = vadd.xlane.f32.xlu0 %v2609_v34 }
 0x1a5   : > { %v847_v37 = vmul.f32 %v786_v35, %v432_v36 }
 0x1a7   : > { %2035 = vmatmul.msk.f32.gmra.mxu2 %vm455_vm0, %v847_v37  ;;  %v445_v37 = vld [vmem:[%s2534_s11 + $0xf0] sm:$0xff] }
 0x1aa   : > { %v788_v39 = vpop.f32.mrf.mxu1  ;;  %v2615_v40 = vpop.f32.mrf.mxu2 }
 0x1ab   : > { %v789_v41 = vadd.f32 %v2539_v42, %v788_v39  ;;  %1077 = vadd.xlane.f32.xlu0 %v2615_v40 }
 0x1ad   : > { %v848_v43 = vmul.f32 %v789_v41, %v433_v38 }
 0x1af   : > { %2036 = vmatmul.msk.f32.gmra.mxu2 %vm455_vm0, %v848_v43 }
 0x1b2   : > { %v791_v45 = vpop.f32.mrf.mxu1  ;;  %v2621_v46 = vpop.f32.mrf.mxu2 }
 0x1b3   : > { %v792_v47 = vadd.f32 %v2539_v42, %v791_v45  ;;  %1079 = vadd.xlane.f32.xlu1 %v2621_v46 }
 0x1b5   : > { %v849_v48 = vmul.f32 %v792_v47, %v434_v44  ;;  %v2698_v47 = vld [vmem:[%s3147_s9] ss:$0 sm:$0xff] }
 0x1b7   : > { %2037 = vmatmul.msk.f32.gmra.mxu2 %vm455_vm0, %v849_v48  ;;  %v446_v48 = vld [vmem:[%s2534_s11 + $0xf8] sm:$0xff]  ;;  %s2888_s11 = scalar_lea.vmem [#allocation2], %s1981_s30 }
 0x1b8   : > { %s1900_s30 = sshll.u32 %s2888_s11, 4  ;;  %s1901_s30 = int_to_ptr.vmem [resolvable:$true] %s1900_s30 }
 0x1ba   : > { %v794_v50 = vpop.f32.mrf.mxu1  ;;  %v2627_v51 = vpop.f32.mrf.mxu2 }
 0x1bb   : > { %v795_v52 = vadd.f32 %v2539_v42, %v794_v50  ;;  %1081 = vadd.xlane.f32.xlu1 %v2627_v51 }
 0x1bd   : > { %v850_v53 = vmul.f32 %v795_v52, %v435_v49 }
 0x1bf   : > { %2038 = vmatmul.msk.f32.gmra.mxu2 %vm455_vm0, %v850_v53 }
 0x1c2   : > { %v797_v55 = vpop.f32.mrf.mxu1  ;;  %v2633_v56 = vpop.f32.mrf.mxu2 }
 0x1c3   : > { %v798_v57 = vadd.f32 %v2539_v42, %v797_v55  ;;  %1083 = vadd.xlane.f32.xlu2 %v2633_v56 }
 0x1c5   : > { %v851_v58 = vmul.f32 %v798_v57, %v436_v54 }
 0x1c7   : > { %2039 = vmatmul.msk.f32.gmra.mxu2 %vm455_vm0, %v851_v58 }
 0x1ca   : > { %v2638_v59 = vpop.f32.mrf.mxu2 }
 0x1cb   : > { %1085 = vadd.xlane.f32.xlu2 %v2638_v59 }
 0x1d0   : > { %v800_v61 = vpop.f32.mrf.mxu3 }
 0x1d1   : > { %v801_v62 = vadd.f32 %v2539_v42, %v800_v61 }
 0x1d2   : > { %v2643_v63 = vpop.f32.mrf.mxu2 }
 0x1d3   : > { %v852_v0 = vmul.f32 %v801_v62, %v437_v60  ;;  %1087 = vadd.xlane.f32.xlu0 %v2643_v63 }
 0x1d5   : > { %2040 = vmatmul.msk.f32.gmra.mxu2 %vm455_vm0, %v852_v0 }
 0x1d8   : > { %v803_v2 = vpop.f32.mrf.mxu3 }
 0x1d9   : > { %v804_v3 = vadd.f32 %v2539_v42, %v803_v2 }
 0x1da   : > { %v2649_v4 = vpop.f32.mrf.mxu2 }
 0x1db   : > { %v853_v5 = vmul.f32 %v804_v3, %v438_v1  ;;  %1089 = vadd.xlane.f32.xlu1 %v2649_v4 }
 0x1dd   : > { %2041 = vmatmul.msk.f32.gmra.mxu2 %vm455_vm0, %v853_v5 }
 0x1e0   : > { %v806_v7 = vpop.f32.mrf.mxu3 }
 0x1e1   : > { %v807_v8 = vadd.f32 %v2539_v42, %v806_v7 }
 0x1e2   : > { %v2655_v9 = vpop.f32.mrf.mxu2 }
 0x1e3   : > { %v854_v10 = vmul.f32 %v807_v8, %v439_v6  ;;  %1091 = vadd.xlane.f32.xlu2 %v2655_v9 }
 0x1e5   : > { %2042 = vmatmul.msk.f32.gmra.mxu2 %vm455_vm0, %v854_v10 }
 0x1e8   : > { %v809_v12 = vpop.f32.mrf.mxu3 }
 0x1e9   : > { %v810_v13 = vadd.f32 %v2539_v42, %v809_v12 }
 0x1ea   : > { %v2661_v14 = vpop.f32.mrf.mxu2 }
 0x1eb   : > { %v855_v15 = vmul.f32 %v810_v13, %v440_v11  ;;  %1093 = vadd.xlane.f32.xlu0 %v2661_v14 }
 0x1ed   : > { %2043 = vmatmul.msk.f32.vlgmr.msra.gmra.mxu3 %vm455_vm0, %v855_v15 }
 0x1f0   : > { %v812_v17 = vpop.f32.mrf.mxu3 }
 0x1f1   : > { %v813_v18 = vadd.f32 %v2539_v42, %v812_v17 }
 0x1f2   : > { %v2667_v19 = vpop.f32.mrf.mxu2 }
 0x1f3   : > { %v856_v20 = vmul.f32 %v813_v18, %v441_v16  ;;  %1095 = vadd.xlane.f32.xlu1 %v2667_v19 }
 0x1f5   : > { %2044 = vmatmul.msk.f32.gmra.mxu3 %vm455_vm0, %v856_v20 }
 0x1f8   : > { %v815_v22 = vpop.f32.mrf.mxu3 }
 0x1f9   : > { %v816_v23 = vadd.f32 %v2539_v42, %v815_v22 }
 0x1fa   : > { %v2673_v24 = vpop.f32.mrf.mxu2 }
 0x1fb   : > { %v857_v25 = vmul.f32 %v816_v23, %v442_v21  ;;  %1097 = vadd.xlane.f32.xlu2 %v2673_v24 }
 0x1fd   : > { %2045 = vmatmul.msk.f32.gmra.mxu3 %vm455_vm0, %v857_v25 }
 0x200   : > { %v818_v27 = vpop.f32.mrf.mxu3 }
 0x201   : > { %v819_v28 = vadd.f32 %v2539_v42, %v818_v27 }
 0x202   : > { %v2679_v29 = vpop.f32.mrf.mxu2 }
 0x203   : > { %v858_v30 = vmul.f32 %v819_v28, %v443_v26  ;;  %1099 = vadd.xlane.f32.xlu0 %v2679_v29 }
 0x205   : > { %2046 = vmatmul.msk.f32.gmra.mxu3 %vm455_vm0, %v858_v30 }
 0x208   : > { %v821_v32 = vpop.f32.mrf.mxu3 }
 0x209   : > { %v822_v36 = vadd.f32 %v2539_v42, %v821_v32 }
 0x20a   : > { %v2685_v33 = vpop.f32.mrf.mxu2 }
 0x20b   : > { %v859_v35 = vmul.f32 %v822_v36, %v444_v31  ;;  %1101 = vadd.xlane.f32.xlu1 %v2685_v33 }
 0x20d   : > { %2047 = vmatmul.msk.f32.gmra.mxu3 %vm455_vm0, %v859_v35 }
 0x210   : > { %v824_v38 = vpop.f32.mrf.mxu3 }
 0x211   : > { %v825_v39 = vadd.f32 %v2539_v42, %v824_v38 }
 0x212   : > { %v2691_v41 = vpop.f32.mrf.mxu2 }
 0x213   : > { %v860_v43 = vmul.f32 %v825_v39, %v445_v37  ;;  %1103 = vadd.xlane.f32.xlu2 %v2691_v41 }
 0x215   : > { %2048 = vmatmul.msk.f32.gmra.mxu3 %vm455_vm0, %v860_v43 }
 0x216   : > { %v1076_v44 = vpop.xlane.xlu0 %1075 }
 0x217   : > { %v1139_v45 = vmul.f32 0.03125, %v1076_v44 }
 0x218   : > { %v827_v49 = vpop.f32.mrf.mxu3 }
 0x219   : > { %v1171_v50 = vsub.f32 %v2609_v34, %v1139_v45  ;;  %v828_v52 = vadd.f32 %v2539_v42, %v827_v49 }
 0x21a   : > { %v2703_v53 = vpop.f32.mrf.mxu2 }
 0x21b   : > { %v861_v54 = vmul.f32 %v828_v52, %v446_v48  ;;  %1105 = vadd.xlane.f32.xlu0 %v2703_v53  ;;  %v2707_v55 = vmul.f32 %v2698_v47, %v1171_v50 }
 0x21d   : > { %2049 = vmatmul.msk.f32.gmra.mxu3 %vm455_vm0, %v861_v54  ;;  %v1239_v57 = vmul.f32 %v2707_v55, %v2707_v55 }
 0x21e   : > { %v1078_v58 = vpop.xlane.xlu0 %1077 }
 0x21f   : > { %v1140_v60 = vmul.f32 0.03125, %v1078_v58  ;;  %1271 = vadd.xlane.f32.xlu2 %v1239_v57 }
 0x221   : > { %v1172_v34 = vsub.f32 %v2615_v40, %v1140_v60 }
 0x222   : > { %v2713_v61 = vpop.f32.mrf.mxu2 }
 0x223   : > { %1107 = vadd.xlane.f32.xlu1 %v2713_v61  ;;  %v2717_v42 = vmul.f32 %v2698_v47, %v1172_v34 }
 0x225   : > { %v1240_v62 = vmul.f32 %v2717_v42, %v2717_v42 }
 0x226   : > { %v1080_v0 = vpop.xlane.xlu1 %1079 }
 0x227   : > { %v1141_v1 = vmul.f32 0.03125, %v1080_v0  ;;  %1273 = vadd.xlane.f32.xlu0 %v1240_v62 }
 0x229   : > { %v1173_v2 = vsub.f32 %v2621_v46, %v1141_v1 }
 0x22a   : > { %v2722_v3 = vpop.f32.mrf.mxu2 }
 0x22b   : > { %1109 = vadd.xlane.f32.xlu2 %v2722_v3  ;;  %v2726_v40 = vmul.f32 %v2698_v47, %v1173_v2 }
 0x22d   : > { %v1241_v5 = vmul.f32 %v2726_v40, %v2726_v40 }
 0x22e   : > { %v1082_v6 = vpop.xlane.xlu1 %1081 }
 0x22f   : > { %v1142_v7 = vmul.f32 0.03125, %v1082_v6  ;;  %1275 = vadd.xlane.f32.xlu1 %v1241_v5 }
 0x231   : > { %v1174_v8 = vsub.f32 %v2627_v51, %v1142_v7 }
 0x232   : > { %v2731_v10 = vpop.f32.mrf.mxu2 }
 0x233   : > { %1111 = vadd.xlane.f32.xlu0 %v2731_v10  ;;  %v2735_v46 = vmul.f32 %v2698_v47, %v1174_v8 }
 0x235   : > { %v1242_v11 = vmul.f32 %v2735_v46, %v2735_v46 }
 0x236   : > { %v1084_v12 = vpop.xlane.xlu2 %1083 }
 0x237   : > { %v1143_v13 = vmul.f32 0.03125, %v1084_v12  ;;  %1277 = vadd.xlane.f32.xlu2 %v1242_v11 }
 0x239   : > { %v1175_v15 = vsub.f32 %v2633_v56, %v1143_v13 }
 0x23a   : > { %v2740_v16 = vpop.f32.mrf.mxu2 }
 0x23b   : > { %1113 = vadd.xlane.f32.xlu1 %v2740_v16  ;;  %v2744_v51 = vmul.f32 %v2698_v47, %v1175_v15 }
 0x23d   : > { %v1243_v17 = vmul.f32 %v2744_v51, %v2744_v51 }
 0x23e   : > { %v1086_v18 = vpop.xlane.xlu2 %1085 }
 0x23f   : > { %v1144_v20 = vmul.f32 0.03125, %v1086_v18  ;;  %1279 = vadd.xlane.f32.xlu0 %v1243_v17 }
 0x241   : > { %v1176_v21 = vsub.f32 %v2638_v59, %v1144_v20 }
 0x242   : > { %v2749_v22 = vpop.f32.mrf.mxu2 }
 0x243   : > { %1115 = vadd.xlane.f32.xlu2 %v2749_v22  ;;  %v2753_v56 = vmul.f32 %v2698_v47, %v1176_v21 }
 0x245   : > { %v1244_v23 = vmul.f32 %v2753_v56, %v2753_v56 }
 0x246   : > { %v1088_v25 = vpop.xlane.xlu0 %1087 }
 0x247   : > { %v1145_v26 = vmul.f32 0.03125, %v1088_v25  ;;  %1281 = vadd.xlane.f32.xlu1 %v1244_v23 }
 0x249   : > { %v1177_v27 = vsub.f32 %v2643_v63, %v1145_v26 }
 0x24a   : > { %v2758_v28 = vpop.f32.mrf.mxu2 }
 0x24b   : > { %1117 = vadd.xlane.f32.xlu0 %v2758_v28  ;;  %v2762_v59 = vmul.f32 %v2698_v47, %v1177_v27 }
 0x24d   : > { %v1245_v30 = vmul.f32 %v2762_v59, %v2762_v59 }
 0x24e   : > { %v1090_v31 = vpop.xlane.xlu1 %1089 }
 0x24f   : > { %v1146_v32 = vmul.f32 0.03125, %v1090_v31  ;;  %1283 = vadd.xlane.f32.xlu2 %v1245_v30 }
 0x251   : > { %v1178_v36 = vsub.f32 %v2649_v4, %v1146_v32 }
 0x253   : > { %v2768_v35 = vmul.f32 %v2698_v47, %v1178_v36 }
 0x255   : > { %v1246_v63 = vmul.f32 %v2768_v35, %v2768_v35 }
 0x256   : > { %v1092_v37 = vpop.xlane.xlu2 %1091 }
 0x257   : > { %v1147_v38 = vmul.f32 0.03125, %v1092_v37  ;;  %1285 = vadd.xlane.f32.xlu0 %v1246_v63 }
 0x258   : > { %v2772_v39 = vpop.f32.mrf.mxu2 }
 0x259   : > { %v1179_v43 = vsub.f32 %v2655_v9, %v1147_v38  ;;  %1119 = vadd.xlane.f32.xlu1 %v2772_v39 }
 0x25b   : > { %v2777_v44 = vmul.f32 %v2698_v47, %v1179_v43 }
 0x25d   : > { %v1247_v48 = vmul.f32 %v2777_v44, %v2777_v44 }
 0x25e   : > { %v1094_v45 = vpop.xlane.xlu0 %1093 }
 0x25f   : > { %v1148_v4 = vmul.f32 0.03125, %v1094_v45 }
 0x260   : > { %v2781_v49 = vpop.f32.mrf.mxu2 }
 0x261   : > { %v1180_v50 = vsub.f32 %v2661_v14, %v1148_v4  ;;  %1287 = vadd.xlane.f32.xlu1 %v1247_v48  ;;  %1121 = vadd.xlane.f32.xlu2 %v2781_v49 }
 0x263   : > { %v2786_v52 = vmul.f32 %v2698_v47, %v1180_v50 }
 0x265   : > { %v1248_v57 = vmul.f32 %v2786_v52, %v2786_v52 }
 0x266   : > { %v1096_v9 = vpop.xlane.xlu1 %1095 }
 0x267   : > { %v1149_v54 = vmul.f32 0.03125, %v1096_v9 }
 0x268   : > { %v2790_v58 = vpop.f32.mrf.mxu2 }
 0x269   : > { %v1181_v60 = vsub.f32 %v2667_v19, %v1149_v54  ;;  %1289 = vadd.xlane.f32.xlu2 %v1248_v57  ;;  %1123 = vadd.xlane.f32.xlu0 %v2790_v58 }
 0x26b   : > { %v2795_v14 = vmul.f32 %v2698_v47, %v1181_v60 }
 0x26d   : > { %v1249_v0 = vmul.f32 %v2795_v14, %v2795_v14 }
 0x26e   : > { %v1098_v34 = vpop.xlane.xlu2 %1097 }
 0x26f   : > { %v1150_v62 = vmul.f32 0.03125, %v1098_v34 }
 0x270   : > { %v2799_v1 = vpop.f32.mrf.mxu3 }
 0x271   : > { %v1182_v2 = vsub.f32 %v2673_v24, %v1150_v62  ;;  %1125 = vadd.xlane.f32.xlu1 %v2799_v1  ;;  %1291 = vadd.xlane.f32.xlu0 %v1249_v0 }
 0x273   : > { %v2804_v19 = vmul.f32 %v2698_v47, %v1182_v2 }
 0x275   : > { %v1250_v7 = vmul.f32 %v2804_v19, %v2804_v19 }
 0x276   : > { %v1100_v5 = vpop.xlane.xlu0 %1099 }
 0x277   : > { %v1151_v6 = vmul.f32 0.03125, %v1100_v5 }
 0x278   : > { %v2808_v8 = vpop.f32.mrf.mxu3 }
 0x279   : > { %v1183_v11 = vsub.f32 %v2679_v29, %v1151_v6  ;;  %1293 = vadd.xlane.f32.xlu1 %v1250_v7  ;;  %1127 = vadd.xlane.f32.xlu2 %v2808_v8 }
 0x27b   : > { %v2813_v24 = vmul.f32 %v2698_v47, %v1183_v11 }
 0x27d   : > { %v1251_v15 = vmul.f32 %v2813_v24, %v2813_v24 }
 0x27e   : > { %v1102_v12 = vpop.xlane.xlu1 %1101 }
 0x27f   : > { %v1152_v13 = vmul.f32 0.03125, %v1102_v12 }
 0x280   : > { %v2817_v17 = vpop.f32.mrf.mxu3 }
 0x281   : > { %v1184_v18 = vsub.f32 %v2685_v33, %v1152_v13  ;;  %1295 = vadd.xlane.f32.xlu2 %v1251_v15  ;;  %1129 = vadd.xlane.f32.xlu0 %v2817_v17 }
 0x283   : > { %v2822_v29 = vmul.f32 %v2698_v47, %v1184_v18 }
 0x285   : > { %v1252_v20 = vmul.f32 %v2822_v29, %v2822_v29 }
 0x286   : > { %v1104_v23 = vpop.xlane.xlu2 %1103 }
 0x287   : > { %v1153_v4 = vmul.f32 0.03125, %v1104_v23  ;;  %v2859_v23 = vld [vmem:[%s3145_s7] ss:$0 sm:$0xff] }
 0x288   : > { %v2826_v21 = vpop.f32.mrf.mxu3 }
 0x289   : > { %1131 = vadd.xlane.f32.xlu1 %v2826_v21  ;;  %1297 = vadd.xlane.f32.xlu0 %v1252_v20  ;;  %v1185_v60 = vsub.f32 %v2691_v41, %v1153_v4 }
 0x28b   : > { %v2852_v11 = vmul.f32 %v2698_v47, %v1185_v60 }
 0x28e   : > { %v1106_v25 = vpop.xlane.xlu0 %1105 }
 0x28f   : > { %v1154_v26 = vmul.f32 0.03125, %v1106_v25 }
 0x290   : > { %v2829_v27 = vpop.f32.mrf.mxu3 }
 0x291   : > { %v1186_v33 = vsub.f32 %v2703_v53, %v1154_v26  ;;  %1133 = vadd.xlane.f32.xlu2 %v2829_v27 }
 0x292   : > { %v1272_v30 = vpop.xlane.xlu2 %1271 }
 0x293   : > { %v1335_v31 = vmul.f32 0.03125, %v1272_v30  ;;  %v2834_v32 = vmul.f32 %v2698_v47, %v1186_v33  ;;  %v1253_v33 = vmul.f32 %v2852_v11, %v2852_v11 }
 0x295   : > { %v1367_v36 = vadd.f32 1e-05, %v1335_v31  ;;  %v1254_v38 = vmul.f32 %v2834_v32, %v2834_v32 }
 0x296   : > { %v1108_v63 = vpop.xlane.xlu1 %1107 }
 0x297   : > { %2126 = vrsqrt.f32 %v1367_v36  ;;  %v1155_v37 = vmul.f32 0.03125, %v1108_v63  ;;  %vm1405_vm2 = vweird.f32 %v1367_v36 }
 0x298   : > { %v2838_v43 = vpop.f32.mrf.mxu3 }
 0x299   : > { %v1187_v45 = vsub.f32 %v2713_v61, %v1155_v37  ;;  %1301 = vadd.xlane.f32.xlu2 %v1254_v38  ;;  %1135 = vadd.xlane.f32.xlu0 %v2838_v43 }
 0x29a   : > { %v1274_v53 = vpop.xlane.xlu0 %1273 }
 0x29b   : > { %v1336_v48 = vmul.f32 0.03125, %v1274_v53  ;;  %v2843_v50 = vmul.f32 %v2698_v47, %v1187_v45 }
 0x29d   : > { %v2127_v9 = vpop.eup %2126  ;;  %v1368_v54 = vadd.f32 1e-05, %v1336_v48  ;;  %v1255_v34 = vmul.f32 %v2843_v50, %v2843_v50 }
 0x29e   : > { %v1400_v57 = vmul.f32 %v2127_v9, %v1367_v36  ;;  %v1110_v61 = vpop.xlane.xlu2 %1109  ;;  %vm1406_vm1 = vweird.f32 %v2127_v9  ;;  %v2869_v36 = vld [vmem:[%s3146_s8] ss:$0 sm:$0xff] }
 0x29f   : > { %2128 = vrsqrt.f32 %v1368_v54  ;;  %v1156_v6 = vmul.f32 0.03125, %v1110_v61  ;;  %vm1407_vm3 = vmor %vm1405_vm2, %vm1406_vm1  ;;  %vm1415_vm5 = vweird.f32 %v1368_v54 }
 0x2a0   : > { %v1401_v62 = vmul.f32 %v2127_v9, %v1400_v57  ;;  %v2848_v0 = vpop.f32.mrf.mxu3 }
 0x2a1   : > { %1137 = vadd.xlane.f32.xlu1 %v2848_v0  ;;  %1303 = vadd.xlane.f32.xlu0 %v1255_v34  ;;  %v1188_v25 = vsub.f32 %v2722_v3, %v1156_v6 }
 0x2a2   : > { %v1402_v2 = vmul.f32 0.5, %v1401_v62  ;;  %v1276_v5 = vpop.xlane.xlu1 %1275 }
 0x2a3   : > { %v1337_v7 = vmul.f32 0.03125, %v1276_v5  ;;  %v2880_v48 = vmul.f32 %v2698_v47, %v1188_v25 }
 0x2a4   : > { %v1403_v41 = vsub.f32 1.5, %v1402_v2 }
 0x2a5   : > { %v2129_v12 = vpop.eup %2128  ;;  %v2854_v13 = vadd.f32 1e-05, %v1337_v7  ;;  %v1256_v6 = vmul.f32 %v2880_v48, %v2880_v48 }
 0x2a6   : > { %v1404_v15 = vmul.f32 %v2127_v9, %v1403_v41  ;;  %v1410_v18 = vmul.f32 %v2129_v12, %v1368_v54  ;;  %v1112_v20 = vpop.xlane.xlu0 %1111  ;;  %vm1416_vm4 = vweird.f32 %v2129_v12 }
 0x2a7   : > { %2130 = vrsqrt.f32 %v2854_v13  ;;  %v1157_v26 = vmul.f32 0.03125, %v1112_v20  ;;  %vm1417_vm6 = vmor %vm1415_vm5, %vm1416_vm4  ;;  %vm1425_vm8 = vweird.f32 %v2854_v13 }
 0x2a8   : > { %v1408_v30 = vsel %vm1407_vm3, %v2127_v9, %v1404_v15  ;;  %v1411_v31 = vmul.f32 %v2129_v12, %v1410_v18 }
 0x2a9   : > { %v1719_v63 = vmul.f32 %v1408_v30, %v2707_v55  ;;  %v1189_v37 = vsub.f32 %v2731_v10, %v1157_v26  ;;  %1299 = vadd.xlane.f32.xlu1 %v1253_v33 }
 0x2aa   : > { %v1412_v3 = vmul.f32 0.5, %v1411_v31  ;;  %v1278_v38 = vpop.xlane.xlu2 %1277 }
 0x2ab   : > { %v1755_v45 = vmul.f32 %v2859_v23, %v1719_v63  ;;  %v1338_v53 = vmul.f32 0.03125, %v1278_v38  ;;  %v2877_v4 = vmul.f32 %v2698_v47, %v1189_v37 }
 0x2ac   : > { %v1413_v9 = vsub.f32 1.5, %v1412_v3 }
 0x2ad   : > { %v2131_v57 = vpop.eup %2130  ;;  %v1791_v55 = vadd.f32 %v2869_v36, %v1755_v45  ;;  %v1370_v10 = vadd.f32 1e-05, %v1338_v53  ;;  %v1257_v60 = vmul.f32 %v2877_v4, %v2877_v4 }
 0x2ae   : > { %v1414_v34 = vmul.f32 %v2129_v12, %v1413_v9  ;;  %v1420_v62 = vmul.f32 %v2131_v57, %v2854_v13  ;;  %v1114_v61 = vpop.xlane.xlu1 %1113  ;;  %vm1426_vm7 = vweird.f32 %v2131_v57 }
 0x2af   : > { %v1823_v2 = vmax.f32 %v1791_v55, 0.0  ;;  %2132 = vrsqrt.f32 %v1370_v10  ;;  %v1158_v5 = vmul.f32 0.03125, %v1114_v61  ;;  %1307 = vadd.xlane.f32.xlu2 %v1257_v60  ;;  %vm1427_vm9 = vmor %vm1425_vm8, %vm1426_vm7  ;;  %vm1435_vm11 = vweird.f32 %v1370_v10 }
 0x2b0   : > { %v1418_v7 = vsel %vm1417_vm6, %v2129_v12, %v1414_v34  ;;  %v1421_v41 = vmul.f32 %v2131_v57, %v1420_v62 }
 0x2b1   : > { %1855 = vst [vmem:[%s2888_s11] sm:$0xff] %v1823_v2  ;;  %v1720_v15 = vmul.f32 %v1418_v7, %v2717_v42  ;;  %v1190_v54 = vsub.f32 %v2740_v16, %v1158_v5  ;;  %1305 = vadd.xlane.f32.xlu1 %v1256_v6 }
 0x2b2   : > { %v1422_v18 = vmul.f32 0.5, %v1421_v41  ;;  %v1280_v20 = vpop.xlane.xlu0 %1279 }
 0x2b3   : > { %v1756_v25 = vmul.f32 %v2859_v23, %v1720_v15  ;;  %v1339_v26 = vmul.f32 0.03125, %v1280_v20  ;;  %v2895_v33 = vmul.f32 %v2698_v47, %v1190_v54 }
 0x2b4   : > { %v1423_v30 = vsub.f32 1.5, %v1422_v18 }
 0x2b5   : > { %v2133_v12 = vpop.eup %2132  ;;  %v1792_v31 = vadd.f32 %v2869_v36, %v1756_v25  ;;  %v1371_v63 = vadd.f32 1e-05, %v1339_v26  ;;  %v1258_v42 = vmul.f32 %v2895_v33, %v2895_v33 }
 0x2b6   : > { %v1424_v16 = vmul.f32 %v2131_v57, %v1423_v30  ;;  %v1430_v37 = vmul.f32 %v2133_v12, %v1370_v10  ;;  %v1116_v3 = vpop.xlane.xlu2 %1115  ;;  %vm1436_vm10 = vweird.f32 %v2133_v12 }
 0x2b7   : > { %v1824_v38 = vmax.f32 %v1792_v31, 0.0  ;;  %2134 = vrsqrt.f32 %v1371_v63  ;;  %v1159_v45 = vmul.f32 0.03125, %v1116_v3  ;;  %1309 = vadd.xlane.f32.xlu0 %v1258_v42  ;;  %vm1437_vm12 = vmor %vm1435_vm11, %vm1436_vm10  ;;  %vm1445_vm14 = vweird.f32 %v1371_v63 }
 0x2b8   : > { %v1428_v53 = vsel %vm1427_vm9, %v2131_v57, %v1424_v16  ;;  %v1431_v9 = vmul.f32 %v2133_v12, %v1430_v37 }
 0x2b9   : > { %1856 = vst [vmem:[%s2888_s11 + $0x8] sm:$0xff] %v1824_v38  ;;  %v1721_v55 = vmul.f32 %v1428_v53, %v2726_v40  ;;  %v1191_v60 = vsub.f32 %v2749_v22, %v1159_v45 }
 0x2ba   : > { %v1432_v34 = vmul.f32 0.5, %v1431_v9  ;;  %v1282_v62 = vpop.xlane.xlu1 %1281 }
 0x2bb   : > { %v1757_v61 = vmul.f32 %v2859_v23, %v1721_v55  ;;  %v1340_v2 = vmul.f32 0.03125, %v1282_v62  ;;  %v2906_v13 = vmul.f32 %v2698_v47, %v1191_v60 }
 0x2bc   : > { %v1433_v5 = vsub.f32 1.5, %v1432_v34 }
 0x2bd   : > { %v2135_v6 = vpop.eup %2134  ;;  %v1793_v57 = vadd.f32 %v2869_v36, %v1757_v61  ;;  %v1372_v7 = vadd.f32 1e-05, %v1340_v2  ;;  %v1259_v40 = vmul.f32 %v2906_v13, %v2906_v13 }
 0x2be   : > { %v1434_v41 = vmul.f32 %v2133_v12, %v1433_v5  ;;  %v1440_v22 = vmul.f32 %v2135_v6, %v1371_v63  ;;  %v1118_v15 = vpop.xlane.xlu0 %1117  ;;  %vm1446_vm13 = vweird.f32 %v2135_v6 }
 0x2bf   : > { %v1825_v54 = vmax.f32 %v1793_v57, 0.0  ;;  %2136 = vrsqrt.f32 %v1372_v7  ;;  %v1160_v18 = vmul.f32 0.03125, %v1118_v15  ;;  %1311 = vadd.xlane.f32.xlu1 %v1259_v40  ;;  %vm1447_vm15 = vmor %vm1445_vm14, %vm1446_vm13  ;;  %vm1455_vm1 = vweird.f32 %v1372_v7 }
 0x2c0   : > { %v1438_v20 = vsel %vm1437_vm12, %v2133_v12, %v1434_v41  ;;  %v1441_v25 = vmul.f32 %v2135_v6, %v1440_v22 }
 0x2c1   : > { %1857 = vst [vmem:[%s2888_s11 + $0x10] sm:$0xff] %v1825_v54  ;;  %v1722_v26 = vmul.f32 %v1438_v20, %v2735_v46  ;;  %v1192_v30 = vsub.f32 %v2758_v28, %v1160_v18 }
 0x2c2   : > { %v1442_v31 = vmul.f32 0.5, %v1441_v25  ;;  %v1284_v42 = vpop.xlane.xlu2 %1283 }
 0x2c3   : > { %v1758_v16 = vmul.f32 %v2859_v23, %v1722_v26  ;;  %v1341_v37 = vmul.f32 0.03125, %v1284_v42  ;;  %v2916_v10 = vmul.f32 %v2698_v47, %v1192_v30 }
 0x2c4   : > { %v1443_v3 = vsub.f32 1.5, %v1442_v31 }
 0x2c5   : > { %v2137_v38 = vpop.eup %2136  ;;  %v1794_v12 = vadd.f32 %v2869_v36, %v1758_v16  ;;  %v1373_v45 = vadd.f32 1e-05, %v1341_v37  ;;  %v1260_v46 = vmul.f32 %v2916_v10, %v2916_v10 }
 0x2c6   : > { %v1444_v53 = vmul.f32 %v2135_v6, %v1443_v3  ;;  %v1450_v28 = vmul.f32 %v2137_v38, %v1372_v7  ;;  %vm1456_vm0 = vweird.f32 %v2137_v38 }
 0x2c7   : > { %v1826_v9 = vmax.f32 %v1794_v12, 0.0  ;;  %2138 = vrsqrt.f32 %v1373_v45  ;;  %1313 = vadd.xlane.f32.xlu2 %v1260_v46  ;;  %vm1457_vm2 = vmor %vm1455_vm1, %vm1456_vm0  ;;  %vm1465_vm4 = vweird.f32 %v1373_v45 }
 0x2c8   : > { %v1448_v55 = vsel %vm1447_vm15, %v2135_v6, %v1444_v53  ;;  %v1451_v60 = vmul.f32 %v2137_v38, %v1450_v28 }
 0x2c9   : > { %1858 = vst [vmem:[%s2888_s11 + $0x18] sm:$0xff] %v1826_v9  ;;  %v1723_v34 = vmul.f32 %v1448_v55, %v2744_v51 }
 0x2ca   : > { %v1452_v62 = vmul.f32 0.5, %v1451_v60  ;;  %v1286_v61 = vpop.xlane.xlu0 %1285 }
 0x2cb   : > { %v1759_v2 = vmul.f32 %v2859_v23, %v1723_v34  ;;  %v1342_v5 = vmul.f32 0.03125, %v1286_v61 }
 0x2cc   : > { %v1453_v57 = vsub.f32 1.5, %v1452_v62  ;;  %v1120_v40 = vpop.xlane.xlu1 %1119 }
 0x2cd   : > { %v2139_v63 = vpop.eup %2138  ;;  %v1795_v41 = vadd.f32 %v2869_v36, %v1759_v2  ;;  %v1374_v22 = vadd.f32 1e-05, %v1342_v5  ;;  %v1161_v15 = vmul.f32 0.03125, %v1120_v40 }
 0x2ce   : > { %v1454_v54 = vmul.f32 %v2137_v38, %v1453_v57  ;;  %v1460_v6 = vmul.f32 %v2139_v63, %v1373_v45  ;;  %vm1466_vm3 = vweird.f32 %v2139_v63 }
 0x2cf   : > { %v1827_v18 = vmax.f32 %v1795_v41, 0.0  ;;  %2140 = vrsqrt.f32 %v1374_v22  ;;  %v1193_v51 = vsub.f32 %v2772_v39, %v1161_v15  ;;  %vm1467_vm5 = vmor %vm1465_vm4, %vm1466_vm3  ;;  %vm1475_vm7 = vweird.f32 %v1374_v22 }
 0x2d0   : > { %v1458_v20 = vsel %vm1457_vm2, %v2137_v38, %v1454_v54  ;;  %v1461_v25 = vmul.f32 %v2139_v63, %v1460_v6 }
 0x2d1   : > { %1859 = vst [vmem:[%s2888_s11 + $0x20] sm:$0xff] %v1827_v18  ;;  %v1724_v26 = vmul.f32 %v1458_v20, %v2753_v56  ;;  %v2929_v30 = vmul.f32 %v2698_v47, %v1193_v51 }
 0x2d2   : > { %v1462_v31 = vmul.f32 0.5, %v1461_v25 }
 0x2d3   : > { %v1760_v42 = vmul.f32 %v2859_v23, %v1724_v26  ;;  %v1261_v7 = vmul.f32 %v2929_v30, %v2929_v30 }
 0x2d4   : > { %v1463_v16 = vsub.f32 1.5, %v1462_v31  ;;  %v1288_v37 = vpop.xlane.xlu1 %1287  ;;  %v1122_v3 = vpop.xlane.xlu2 %1121 }
 0x2d5   : > { %v2141_v39 = vpop.eup %2140  ;;  %v1796_v38 = vadd.f32 %v2869_v36, %v1760_v42  ;;  %v1343_v12 = vmul.f32 0.03125, %v1288_v37  ;;  %v1162_v46 = vmul.f32 0.03125, %v1122_v3  ;;  %1315 = vadd.xlane.f32.xlu0 %v1261_v7 }
 0x2d6   : > { %v1464_v56 = vmul.f32 %v2139_v63, %v1463_v16  ;;  %v1470_v53 = vmul.f32 %v2141_v39, %v1374_v22  ;;  %vm1476_vm6 = vweird.f32 %v2141_v39 }
 0x2d7   : > { %v1828_v28 = vmax.f32 %v1796_v38, 0.0  ;;  %v1375_v9 = vadd.f32 1e-05, %v1343_v12  ;;  %v1194_v55 = vsub.f32 %v2781_v49, %v1162_v46  ;;  %vm1477_vm8 = vmor %vm1475_vm7, %vm1476_vm6 }
 0x2d8   : > { %v1468_v60 = vsel %vm1467_vm5, %v2139_v63, %v1464_v56  ;;  %v1471_v34 = vmul.f32 %v2141_v39, %v1470_v53 }
 0x2d9   : > { %1860 = vst [vmem:[%s2888_s11 + $0x28] sm:$0xff] %v1828_v28  ;;  %v1725_v62 = vmul.f32 %v1468_v60, %v2762_v59  ;;  %2142 = vrsqrt.f32 %v1375_v9  ;;  %v2939_v61 = vmul.f32 %v2698_v47, %v1194_v55  ;;  %vm1485_vm10 = vweird.f32 %v1375_v9 }
 0x2da   : > { %v1472_v2 = vmul.f32 0.5, %v1471_v34 }
 0x2db   : > { %v1761_v5 = vmul.f32 %v2859_v23, %v1725_v62  ;;  %v1262_v45 = vmul.f32 %v2939_v61, %v2939_v61 }
 0x2dc   : > { %v1473_v57 = vsub.f32 1.5, %v1472_v2  ;;  %v1290_v40 = vpop.xlane.xlu2 %1289  ;;  %v1124_v49 = vpop.xlane.xlu0 %1123 }
 0x2dd   : > { %v1797_v63 = vadd.f32 %v2869_v36, %v1761_v5  ;;  %v1344_v41 = vmul.f32 0.03125, %v1290_v40  ;;  %v1163_v15 = vmul.f32 0.03125, %v1124_v49  ;;  %1317 = vadd.xlane.f32.xlu1 %v1262_v45 }
 0x2de   : > { %v1474_v59 = vmul.f32 %v2141_v39, %v1473_v57 }
 0x2df   : > { %v2143_v54 = vpop.eup %2142  ;;  %v1829_v6 = vmax.f32 %v1797_v63, 0.0  ;;  %v1376_v18 = vadd.f32 1e-05, %v1344_v41  ;;  %v1195_v51 = vsub.f32 %v2790_v58, %v1163_v15 }
 0x2e0   : > { %v1478_v20 = vsel %vm1477_vm8, %v2141_v39, %v1474_v59  ;;  %v1480_v25 = vmul.f32 %v2143_v54, %v1375_v9  ;;  %vm1486_vm9 = vweird.f32 %v2143_v54 }
 0x2e1   : > { %1861 = vst [vmem:[%s2888_s11 + $0x30] sm:$0xff] %v1829_v6  ;;  %v1726_v26 = vmul.f32 %v1478_v20, %v2768_v35  ;;  %2144 = vrsqrt.f32 %v1376_v18  ;;  %v2949_v31 = vmul.f32 %v2698_v47, %v1195_v51  ;;  %vm1487_vm11 = vmor %vm1485_vm10, %vm1486_vm9  ;;  %vm1495_vm13 = vweird.f32 %v1376_v18 }
 0x2e2   : > { %v1481_v42 = vmul.f32 %v2143_v54, %v1480_v25 }
 0x2e3   : > { %v1762_v7 = vmul.f32 %v2859_v23, %v1726_v26  ;;  %v1263_v22 = vmul.f32 %v2949_v31, %v2949_v31 }
 0x2e4   : > { %v1482_v16 = vmul.f32 0.5, %v1481_v42  ;;  %v1126_v37 = vpop.xlane.xlu1 %1125  ;;  %v1292_v3 = vpop.xlane.xlu0 %1291 }
 0x2e5   : > { %v1798_v58 = vadd.f32 %v2869_v36, %v1762_v7  ;;  %v1164_v39 = vmul.f32 0.03125, %v1126_v37  ;;  %v1345_v38 = vmul.f32 0.03125, %v1292_v3  ;;  %1319 = vadd.xlane.f32.xlu2 %v1263_v22 }
 0x2e6   : > { %v1483_v35 = vsub.f32 1.5, %v1482_v16 }
 0x2e7   : > { %v2145_v12 = vpop.eup %2144  ;;  %v1830_v46 = vmax.f32 %v1798_v58, 0.0  ;;  %v1196_v56 = vsub.f32 %v2799_v1, %v1164_v39  ;;  %v1377_v53 = vadd.f32 1e-05, %v1345_v38 }
 0x2e8   : > { %v1484_v28 = vmul.f32 %v2143_v54, %v1483_v35  ;;  %v1490_v55 = vmul.f32 %v2145_v12, %v1376_v18  ;;  %vm1496_vm12 = vweird.f32 %v2145_v12 }
 0x2e9   : > { %1862 = vst [vmem:[%s2888_s11 + $0x38] sm:$0xff] %v1830_v46  ;;  %2146 = vrsqrt.f32 %v1377_v53  ;;  %v2958_v60 = vmul.f32 %v2698_v47, %v1196_v56  ;;  %vm1497_vm14 = vmor %vm1495_vm13, %vm1496_vm12  ;;  %vm1505_vm0 = vweird.f32 %v1377_v53 }
 0x2ea   : > { %v1488_v34 = vsel %vm1487_vm11, %v2143_v54, %v1484_v28  ;;  %v1491_v62 = vmul.f32 %v2145_v12, %v1490_v55 }
 0x2eb   : > { %v1727_v2 = vmul.f32 %v1488_v34, %v2777_v44  ;;  %v1264_v5 = vmul.f32 %v2958_v60, %v2958_v60 }
 0x2ec   : > { %v1492_v45 = vmul.f32 0.5, %v1491_v62  ;;  %v1294_v57 = vpop.xlane.xlu1 %1293  ;;  %v1128_v1 = vpop.xlane.xlu2 %1127 }
 0x2ed   : > { %v1763_v40 = vmul.f32 %v2859_v23, %v1727_v2  ;;  %v1346_v9 = vmul.f32 0.03125, %v1294_v57  ;;  %v1165_v49 = vmul.f32 0.03125, %v1128_v1  ;;  %1321 = vadd.xlane.f32.xlu0 %v1264_v5 }
 0x2ee   : > { %v1493_v63 = vsub.f32 1.5, %v1492_v45 }
 0x2ef   : > { %v2147_v41 = vpop.eup %2146  ;;  %v1799_v15 = vadd.f32 %v2869_v36, %v1763_v40  ;;  %v1378_v59 = vadd.f32 1e-05, %v1346_v9  ;;  %v1197_v44 = vsub.f32 %v2808_v8, %v1165_v49 }
 0x2f0   : > { %v1494_v54 = vmul.f32 %v2145_v12, %v1493_v63  ;;  %v1500_v6 = vmul.f32 %v2147_v41, %v1377_v53  ;;  %vm1506_vm15 = vweird.f32 %v2147_v41 }
 0x2f1   : > { %v1831_v51 = vmax.f32 %v1799_v15, 0.0  ;;  %2148 = vrsqrt.f32 %v1378_v59  ;;  %v2967_v20 = vmul.f32 %v2698_v47, %v1197_v44  ;;  %vm1507_vm1 = vmor %vm1505_vm0, %vm1506_vm15  ;;  %vm1515_vm3 = vweird.f32 %v1378_v59 }
 0x2f2   : > { %v1498_v25 = vsel %vm1497_vm14, %v2145_v12, %v1494_v54  ;;  %v1501_v26 = vmul.f32 %v2147_v41, %v1500_v6 }
 0x2f3   : > { %1863 = vst [vmem:[%s2888_s11 + $0x40] sm:$0xff] %v1831_v51  ;;  %v1728_v42 = vmul.f32 %v1498_v25, %v2786_v52  ;;  %v1265_v7 = vmul.f32 %v2967_v20, %v2967_v20 }
 0x2f4   : > { %v1502_v22 = vmul.f32 0.5, %v1501_v26  ;;  %v1296_v16 = vpop.xlane.xlu2 %1295  ;;  %v1130_v8 = vpop.xlane.xlu0 %1129 }
 0x2f5   : > { %v1764_v18 = vmul.f32 %v2859_v23, %v1728_v42  ;;  %v1347_v37 = vmul.f32 0.03125, %v1296_v16  ;;  %v1166_v3 = vmul.f32 0.03125, %v1130_v8  ;;  %1323 = vadd.xlane.f32.xlu1 %v1265_v7 }
 0x2f6   : > { %v1503_v58 = vsub.f32 1.5, %v1502_v22 }
 0x2f7   : > { %v2149_v39 = vpop.eup %2148  ;;  %v1800_v38 = vadd.f32 %v2869_v36, %v1764_v18  ;;  %v1379_v35 = vadd.f32 1e-05, %v1347_v37  ;;  %v1198_v52 = vsub.f32 %v2817_v17, %v1166_v3 }
 0x2f8   : > { %v1504_v12 = vmul.f32 %v2147_v41, %v1503_v58  ;;  %v1510_v46 = vmul.f32 %v2149_v39, %v1378_v59  ;;  %vm1516_vm2 = vweird.f32 %v2149_v39 }
 0x2f9   : > { %v1832_v56 = vmax.f32 %v1800_v38, 0.0  ;;  %2150 = vrsqrt.f32 %v1379_v35  ;;  %v2977_v28 = vmul.f32 %v2698_v47, %v1198_v52  ;;  %vm1517_vm4 = vmor %vm1515_vm3, %vm1516_vm2  ;;  %vm1525_vm6 = vweird.f32 %v1379_v35 }
 0x2fa   : > { %v1508_v55 = vsel %vm1507_vm1, %v2147_v41, %v1504_v12  ;;  %v1511_v34 = vmul.f32 %v2149_v39, %v1510_v46 }
 0x2fb   : > { %1864 = vst [vmem:[%s2888_s11 + $0x48] sm:$0xff] %v1832_v56  ;;  %v1729_v62 = vmul.f32 %v1508_v55, %v2795_v14  ;;  %v1266_v2 = vmul.f32 %v2977_v28, %v2977_v28 }
 0x2fc   : > { %v1512_v5 = vmul.f32 0.5, %v1511_v34  ;;  %v1132_v45 = vpop.xlane.xlu1 %1131  ;;  %v1298_v17 = vpop.xlane.xlu0 %1297 }
 0x2fd   : > { %v1765_v53 = vmul.f32 %v2859_v23, %v1729_v62  ;;  %v1167_v57 = vmul.f32 0.03125, %v1132_v45  ;;  %v1348_v1 = vmul.f32 0.03125, %v1298_v17  ;;  %1325 = vadd.xlane.f32.xlu2 %v1266_v2 }
 0x2fe   : > { %v1513_v40 = vsub.f32 1.5, %v1512_v5 }
 0x2ff   : > { %v2151_v9 = vpop.eup %2150  ;;  %v1801_v49 = vadd.f32 %v2869_v36, %v1765_v53  ;;  %v1199_v63 = vsub.f32 %v2826_v21, %v1167_v57  ;;  %v1380_v14 = vadd.f32 1e-05, %v1348_v1 }
 0x300   : > { %v1514_v41 = vmul.f32 %v2149_v39, %v1513_v40  ;;  %v1520_v15 = vmul.f32 %v2151_v9, %v1379_v35  ;;  %vm1526_vm5 = vweird.f32 %v2151_v9 }
 0x301   : > { %v1833_v44 = vmax.f32 %v1801_v49, 0.0  ;;  %2152 = vrsqrt.f32 %v1380_v14  ;;  %v2987_v54 = vmul.f32 %v2698_v47, %v1199_v63  ;;  %vm1527_vm7 = vmor %vm1525_vm6, %vm1526_vm5  ;;  %vm1535_vm9 = vweird.f32 %v1380_v14 }
 0x302   : > { %v1518_v6 = vsel %vm1517_vm4, %v2149_v39, %v1514_v41  ;;  %v1521_v51 = vmul.f32 %v2151_v9, %v1520_v15 }
 0x303   : > { %1865 = vst [vmem:[%s2888_s11 + $0x50] sm:$0xff] %v1833_v44  ;;  %v1730_v25 = vmul.f32 %v1518_v6, %v2804_v19  ;;  %v1267_v26 = vmul.f32 %v2987_v54, %v2987_v54 }
 0x304   : > { %v1522_v42 = vmul.f32 0.5, %v1521_v51  ;;  %v1134_v21 = vpop.xlane.xlu2 %1133 }
 0x305   : > { %v1766_v7 = vmul.f32 %v2859_v23, %v1730_v25  ;;  %v1168_v59 = vmul.f32 0.03125, %v1134_v21  ;;  %1327 = vadd.xlane.f32.xlu0 %v1267_v26 }
 0x306   : > { %v1523_v22 = vsub.f32 1.5, %v1522_v42 }
 0x307   : > { %v2153_v16 = vpop.eup %2152  ;;  %v1802_v8 = vadd.f32 %v2869_v36, %v1766_v7  ;;  %v1200_v18 = vsub.f32 %v2829_v27, %v1168_v59 }
 0x308   : > { %v1524_v37 = vmul.f32 %v2151_v9, %v1523_v22  ;;  %v1530_v19 = vmul.f32 %v2153_v16, %v1380_v14  ;;  %vm1536_vm8 = vweird.f32 %v2153_v16 }
 0x309   : > { %v1834_v3 = vmax.f32 %v1802_v8, 0.0  ;;  %v2997_v58 = vmul.f32 %v2698_v47, %v1200_v18  ;;  %vm1537_vm10 = vmor %vm1535_vm9, %vm1536_vm8 }
 0x30a   : > { %v1528_v39 = vsel %vm1527_vm7, %v2151_v9, %v1524_v37  ;;  %v1531_v38 = vmul.f32 %v2153_v16, %v1530_v19 }
 0x30b   : > { %1866 = vst [vmem:[%s2888_s11 + $0x58] sm:$0xff] %v1834_v3  ;;  %v1731_v52 = vmul.f32 %v1528_v39, %v2813_v24  ;;  %v1268_v12 = vmul.f32 %v2997_v58, %v2997_v58 }
 0x30c   : > { %v1532_v46 = vmul.f32 0.5, %v1531_v38  ;;  %v1302_v56 = vpop.xlane.xlu2 %1301  ;;  %v1136_v55 = vpop.xlane.xlu0 %1135 }
 0x30d   : > { %v1767_v27 = vmul.f32 %v2859_v23, %v1731_v52  ;;  %v1350_v35 = vmul.f32 0.03125, %v1302_v56  ;;  %v1169_v34 = vmul.f32 0.03125, %v1136_v55  ;;  %1329 = vadd.xlane.f32.xlu1 %v1268_v12 }
 0x30e   : > { %v1533_v62 = vsub.f32 1.5, %v1532_v46 }
 0x30f   : > { %v1803_v2 = vadd.f32 %v2869_v36, %v1767_v27  ;;  %v1382_v5 = vadd.f32 1e-05, %v1350_v35  ;;  %v1201_v45 = vsub.f32 %v2838_v43, %v1169_v34 }
 0x310   : > { %v1534_v24 = vmul.f32 %v2153_v16, %v1533_v62 }
 0x311   : > { %v1835_v17 = vmax.f32 %v1803_v2, 0.0  ;;  %2154 = vrsqrt.f32 %v1382_v5  ;;  %v3007_v53 = vmul.f32 %v2698_v47, %v1201_v45  ;;  %vm1555_vm12 = vweird.f32 %v1382_v5 }
 0x312   : > { %v1538_v57 = vsel %vm1537_vm10, %v2153_v16, %v1534_v24 }
 0x313   : > { %1867 = vst [vmem:[%s2888_s11 + $0x60] sm:$0xff] %v1835_v17  ;;  %v1732_v1 = vmul.f32 %v1538_v57, %v2822_v29  ;;  %v1269_v40 = vmul.f32 %v3007_v53, %v3007_v53 }
 0x314   : > { %v1138_v9 = vpop.xlane.xlu1 %1137  ;;  %v1304_v49 = vpop.xlane.xlu0 %1303 }
 0x315   : > { %v1768_v43 = vmul.f32 %v2859_v23, %v1732_v1  ;;  %v1170_v63 = vmul.f32 0.03125, %v1138_v9  ;;  %v1351_v14 = vmul.f32 0.03125, %v1304_v49  ;;  %1331 = vadd.xlane.f32.xlu2 %v1269_v40 }
 0x317   : > { %v2155_v41 = vpop.eup %2154  ;;  %v1804_v15 = vadd.f32 %v2869_v36, %v1768_v43  ;;  %v1202_v44 = vsub.f32 %v2848_v0, %v1170_v63  ;;  %v1383_v6 = vadd.f32 1e-05, %v1351_v14 }
 0x318   : > { %v1550_v51 = vmul.f32 %v2155_v41, %v1382_v5  ;;  %vm1556_vm11 = vweird.f32 %v2155_v41 }
 0x319   : > { %v1836_v25 = vmax.f32 %v1804_v15, 0.0  ;;  %2156 = vrsqrt.f32 %v1383_v6  ;;  %v3017_v29 = vmul.f32 %v2698_v47, %v1202_v44  ;;  %vm1557_vm13 = vmor %vm1555_vm12, %vm1556_vm11  ;;  %vm1565_vm15 = vweird.f32 %v1383_v6 }
 0x31a   : > { %v1551_v26 = vmul.f32 %v2155_v41, %v1550_v51 }
 0x31b   : > { %1868 = vst [vmem:[%s2888_s11 + $0x68] sm:$0xff] %v1836_v25  ;;  %v1270_v42 = vmul.f32 %v3017_v29, %v3017_v29 }
 0x31c   : > { %v1552_v21 = vmul.f32 0.5, %v1551_v26  ;;  %v1300_v7 = vpop.xlane.xlu1 %1299 }
 0x31d   : > { %v1349_v59 = vmul.f32 0.03125, %v1300_v7  ;;  %1333 = vadd.xlane.f32.xlu0 %v1270_v42 }
 0x31e   : > { %v1553_v22 = vsub.f32 1.5, %v1552_v21 }
 0x31f   : > { %v2157_v16 = vpop.eup %2156  ;;  %v1381_v0 = vadd.f32 1e-05, %v1349_v59 }
 0x320   : > { %v1554_v8 = vmul.f32 %v2155_v41, %v1553_v22  ;;  %v1560_v18 = vmul.f32 %v2157_v16, %v1383_v6  ;;  %vm1566_vm14 = vweird.f32 %v2157_v16 }
 0x321   : > { %2158 = vrsqrt.f32 %v1381_v0  ;;  %vm1567_vm0 = vmor %vm1565_vm15, %vm1566_vm14  ;;  %vm1545_vm2 = vweird.f32 %v1381_v0 }
 0x322   : > { %v1558_v47 = vsel %vm1557_vm13, %v2155_v41, %v1554_v8  ;;  %v1561_v37 = vmul.f32 %v2157_v16, %v1560_v18  ;;  %v1308_v19 = vpop.xlane.xlu2 %1307 }
 0x323   : > { %v1734_v3 = vmul.f32 %v1558_v47, %v2834_v32  ;;  %v1353_v39 = vmul.f32 0.03125, %v1308_v19 }
 0x324   : > { %v1562_v38 = vmul.f32 0.5, %v1561_v37  ;;  %v1306_v52 = vpop.xlane.xlu1 %1305 }
 0x325   : > { %v1770_v12 = vmul.f32 %v2859_v23, %v1734_v3  ;;  %v1385_v46 = vadd.f32 1e-05, %v1353_v39  ;;  %v1352_v56 = vmul.f32 0.03125, %v1306_v52 }
 0x326   : > { %v1563_v55 = vsub.f32 1.5, %v1562_v38 }
 0x327   : > { %v2159_v27 = vpop.eup %2158  ;;  %v1806_v35 = vadd.f32 %v2869_v36, %v1770_v12  ;;  %2160 = vrsqrt.f32 %v1385_v46  ;;  %v1384_v34 = vadd.f32 1e-05, %v1352_v56  ;;  %vm1585_vm5 = vweird.f32 %v1385_v46 }
 0x328   : > { %v1564_v62 = vmul.f32 %v2157_v16, %v1563_v55  ;;  %v1540_v2 = vmul.f32 %v2159_v27, %v1381_v0  ;;  %vm1546_vm1 = vweird.f32 %v2159_v27 }
 0x329   : > { %v1838_v5 = vmax.f32 %v1806_v35, 0.0  ;;  %2162 = vrsqrt.f32 %v1384_v34  ;;  %vm1547_vm3 = vmor %vm1545_vm2, %vm1546_vm1  ;;  %vm1575_vm8 = vweird.f32 %v1384_v34 }
 0x32a   : > { %v1568_v32 = vsel %vm1567_vm0, %v2157_v16, %v1564_v62  ;;  %v1541_v45 = vmul.f32 %v2159_v27, %v1540_v2  ;;  %v1310_v24 = vpop.xlane.xlu0 %1309 }
 0x32b   : > { %1870 = vst [vmem:[%s2888_s11 + $0x78] sm:$0xff] %v1838_v5  ;;  %v1735_v17 = vmul.f32 %v1568_v32, %v2843_v50  ;;  %v1354_v57 = vmul.f32 0.03125, %v1310_v24 }
 0x32c   : > { %v1542_v1 = vmul.f32 0.5, %v1541_v45 }
 0x32d   : > { %v2161_v40 = vpop.eup %2160  ;;  %v1771_v9 = vmul.f32 %v2859_v23, %v1735_v17  ;;  %v1386_v49 = vadd.f32 1e-05, %v1354_v57 }
 0x32e   : > { %v1543_v43 = vsub.f32 1.5, %v1542_v1  ;;  %v1580_v63 = vmul.f32 %v2161_v40, %v1385_v46  ;;  %vm1586_vm4 = vweird.f32 %v2161_v40 }
 0x32f   : > { %v2163_v14 = vpop.eup %2162  ;;  %v1807_v41 = vadd.f32 %v2869_v36, %v1771_v9  ;;  %2164 = vrsqrt.f32 %v1386_v49  ;;  %vm1587_vm7 = vmor %vm1585_vm5, %vm1586_vm4  ;;  %vm1595_vm11 = vweird.f32 %v1386_v49 }
 0x330   : > { %v1544_v15 = vmul.f32 %v2159_v27, %v1543_v43  ;;  %v1581_v44 = vmul.f32 %v2161_v40, %v1580_v63  ;;  %v1570_v6 = vmul.f32 %v2163_v14, %v1384_v34  ;;  %vm1576_vm6 = vweird.f32 %v2163_v14 }
 0x331   : > { %v1839_v51 = vmax.f32 %v1807_v41, 0.0  ;;  %vm1577_vm9 = vmor %vm1575_vm8, %vm1576_vm6 }
 0x332   : > { %v1548_v50 = vsel %vm1547_vm3, %v2159_v27, %v1544_v15  ;;  %v1582_v25 = vmul.f32 0.5, %v1581_v44  ;;  %v1571_v26 = vmul.f32 %v2163_v14, %v1570_v6  ;;  %v1312_v42 = vpop.xlane.xlu1 %1311 }
 0x333   : > { %1871 = vst [vmem:[%s2888_s11 + $0x80] sm:$0xff] %v1839_v51  ;;  %v1733_v21 = vmul.f32 %v1548_v50, %v2852_v11  ;;  %v1355_v7 = vmul.f32 0.03125, %v1312_v42 }
 0x334   : > { %v1583_v59 = vsub.f32 1.5, %v1582_v25  ;;  %v1572_v22 = vmul.f32 0.5, %v1571_v26 }
 0x335   : > { %v2165_v16 = vpop.eup %2164  ;;  %v1769_v8 = vmul.f32 %v2859_v23, %v1733_v21  ;;  %v1387_v0 = vadd.f32 1e-05, %v1355_v7 }
 0x336   : > { %v1584_v18 = vmul.f32 %v2161_v40, %v1583_v59  ;;  %v1573_v47 = vsub.f32 1.5, %v1572_v22  ;;  %v1590_v37 = vmul.f32 %v2165_v16, %v1386_v49  ;;  %vm1596_vm10 = vweird.f32 %v2165_v16 }
 0x337   : > { %v1805_v19 = vadd.f32 %v2869_v36, %v1769_v8  ;;  %2166 = vrsqrt.f32 %v1387_v0  ;;  %vm1597_vm12 = vmor %vm1595_vm11, %vm1596_vm10  ;;  %vm1605_vm14 = vweird.f32 %v1387_v0 }
 0x338   : > { %v1588_v3 = vsel %vm1587_vm7, %v2161_v40, %v1584_v18  ;;  %v1574_v11 = vmul.f32 %v2163_v14, %v1573_v47  ;;  %v1591_v39 = vmul.f32 %v2165_v16, %v1590_v37 }
 0x339   : > { %v1837_v38 = vmax.f32 %v1805_v19, 0.0  ;;  %v1737_v52 = vmul.f32 %v1588_v3, %v2877_v4 }
 0x33a   : > { %v1578_v12 = vsel %vm1577_vm9, %v2163_v14, %v1574_v11  ;;  %v1592_v46 = vmul.f32 0.5, %v1591_v39  ;;  %v1314_v56 = vpop.xlane.xlu2 %1313 }
 0x33b   : > { %1869 = vst [vmem:[%s2888_s11 + $0x70] sm:$0xff] %v1837_v38  ;;  %v1773_v55 = vmul.f32 %v2859_v23, %v1737_v52  ;;  %v1736_v27 = vmul.f32 %v1578_v12, %v2880_v48  ;;  %v1356_v35 = vmul.f32 0.03125, %v1314_v56 }
 0x33c   : > { %v1593_v62 = vsub.f32 1.5, %v1592_v46 }
 0x33d   : > { %v2167_v2 = vpop.eup %2166  ;;  %v1809_v34 = vadd.f32 %v2869_v36, %v1773_v55  ;;  %v1772_v5 = vmul.f32 %v2859_v23, %v1736_v27  ;;  %v1388_v4 = vadd.f32 1e-05, %v1356_v35 }
 0x33e   : > { %v1594_v32 = vmul.f32 %v2165_v16, %v1593_v62  ;;  %v1600_v45 = vmul.f32 %v2167_v2, %v1387_v0  ;;  %vm1606_vm13 = vweird.f32 %v2167_v2 }
 0x33f   : > { %v1841_v24 = vmax.f32 %v1809_v34, 0.0  ;;  %v1808_v17 = vadd.f32 %v2869_v36, %v1772_v5  ;;  %2168 = vrsqrt.f32 %v1388_v4  ;;  %vm1607_vm15 = vmor %vm1605_vm14, %vm1606_vm13  ;;  %vm1615_vm1 = vweird.f32 %v1388_v4  ;;  %v3058_v5 = vld [vmem:[%s3145_s7] ss:$0 sm:$0xff] }
 0x340   : > { %v1598_v48 = vsel %vm1597_vm12, %v2165_v16, %v1594_v32  ;;  %v1601_v57 = vmul.f32 %v2167_v2, %v1600_v45 }
 0x341   : > { %1873 = vst [vmem:[%s2888_s11 + $0x90] sm:$0xff] %v1841_v24  ;;  %v1840_v1 = vmax.f32 %v1808_v17, 0.0  ;;  %v1738_v40 = vmul.f32 %v1598_v48, %v2895_v33  ;;  %v3064_v17 = vld [vmem:[%s3146_s8] ss:$0 sm:$0xff] }
 0x342   : > { %v1602_v9 = vmul.f32 0.5, %v1601_v57 }
 0x343   : > { %1872 = vst [vmem:[%s2888_s11 + $0x88] sm:$0xff] %v1840_v1  ;;  %v1774_v43 = vmul.f32 %v2859_v23, %v1738_v40 }
 0x344   : > { %v1603_v63 = vsub.f32 1.5, %v1602_v9 }
 0x345   : > { %v2169_v49 = vpop.eup %2168  ;;  %v1810_v14 = vadd.f32 %v2869_v36, %v1774_v43 }
 0x346   : > { %v1604_v41 = vmul.f32 %v2167_v2, %v1603_v63  ;;  %v1610_v15 = vmul.f32 %v2169_v49, %v1388_v4  ;;  %vm1616_vm0 = vweird.f32 %v2169_v49 }
 0x347   : > { %v1842_v44 = vmax.f32 %v1810_v14, 0.0  ;;  %vm1617_vm2 = vmor %vm1615_vm1, %vm1616_vm0 }
 0x348   : > { %v1608_v6 = vsel %vm1607_vm15, %v2167_v2, %v1604_v41  ;;  %v1611_v51 = vmul.f32 %v2169_v49, %v1610_v15  ;;  %v1316_v50 = vpop.xlane.xlu0 %1315 }
 0x349   : > { %1874 = vst [vmem:[%s2888_s11 + $0x98] sm:$0xff] %v1842_v44  ;;  %v1739_v33 = vmul.f32 %v1608_v6, %v2906_v13  ;;  %v1357_v25 = vmul.f32 0.03125, %v1316_v50 }
 0x34a   : > { %v1612_v26 = vmul.f32 0.5, %v1611_v51 }
 0x34b   : > { %v1775_v42 = vmul.f32 %v2859_v23, %v1739_v33  ;;  %v1389_v21 = vadd.f32 1e-05, %v1357_v25 }
 0x34c   : > { %v1613_v7 = vsub.f32 1.5, %v1612_v26 }
 0x34d   : > { %v1811_v59 = vadd.f32 %v2869_v36, %v1775_v42  ;;  %2170 = vrsqrt.f32 %v1389_v21  ;;  %vm1625_vm4 = vweird.f32 %v1389_v21 }
 0x34e   : > { %v1614_v22 = vmul.f32 %v2169_v49, %v1613_v7 }
 0x34f   : > { %v1843_v16 = vmax.f32 %v1811_v59, 0.0 }
 0x350   : > { %v1618_v8 = vsel %vm1617_vm2, %v2169_v49, %v1614_v22  ;;  %v1318_v0 = vpop.xlane.xlu1 %1317 }
 0x351   : > { %1875 = vst [vmem:[%s2888_s11 + $0xa0] sm:$0xff] %v1843_v16  ;;  %v1740_v13 = vmul.f32 %v1618_v8, %v2916_v10  ;;  %v1358_v18 = vmul.f32 0.03125, %v1318_v0 }
 0x353   : > { %v2171_v47 = vpop.eup %2170  ;;  %v1776_v37 = vmul.f32 %v2859_v23, %v1740_v13  ;;  %v1390_v19 = vadd.f32 1e-05, %v1358_v18 }
 0x354   : > { %v1620_v3 = vmul.f32 %v2171_v47, %v1389_v21  ;;  %vm1626_vm3 = vweird.f32 %v2171_v47 }
 0x355   : > { %v1812_v11 = vadd.f32 %v2869_v36, %v1776_v37  ;;  %2172 = vrsqrt.f32 %v1390_v19  ;;  %vm1627_vm5 = vmor %vm1625_vm4, %vm1626_vm3  ;;  %vm1635_vm7 = vweird.f32 %v1390_v19 }
 0x356   : > { %v1621_v39 = vmul.f32 %v2171_v47, %v1620_v3 }
 0x357   : > { %v1844_v38 = vmax.f32 %v1812_v11, 0.0 }
 0x358   : > { %v1622_v52 = vmul.f32 0.5, %v1621_v39  ;;  %v1320_v12 = vpop.xlane.xlu2 %1319 }
 0x359   : > { %1876 = vst [vmem:[%s2888_s11 + $0xa8] sm:$0xff] %v1844_v38  ;;  %v1359_v46 = vmul.f32 0.03125, %v1320_v12 }
 0x35a   : > { %v1623_v56 = vsub.f32 1.5, %v1622_v52 }
 0x35b   : > { %v2173_v55 = vpop.eup %2172  ;;  %v1391_v27 = vadd.f32 1e-05, %v1359_v46 }
 0x35c   : > { %v1624_v10 = vmul.f32 %v2171_v47, %v1623_v56  ;;  %v1630_v35 = vmul.f32 %v2173_v55, %v1390_v19  ;;  %vm1636_vm6 = vweird.f32 %v2173_v55 }
 0x35d   : > { %2174 = vrsqrt.f32 %v1391_v27  ;;  %vm1637_vm8 = vmor %vm1635_vm7, %vm1636_vm6  ;;  %vm1645_vm10 = vweird.f32 %v1391_v27 }
 0x35e   : > { %v1628_v23 = vsel %vm1627_vm5, %v2171_v47, %v1624_v10  ;;  %v1631_v62 = vmul.f32 %v2173_v55, %v1630_v35 }
 0x35f   : > { %v1741_v36 = vmul.f32 %v1628_v23, %v2929_v30 }
 0x360   : > { %v1632_v2 = vmul.f32 0.5, %v1631_v62  ;;  %v1322_v34 = vpop.xlane.xlu0 %1321 }
 0x361   : > { %v1777_v4 = vmul.f32 %v3058_v5, %v1741_v36  ;;  %v1360_v32 = vmul.f32 0.03125, %v1322_v34 }
 0x362   : > { %v1633_v45 = vsub.f32 1.5, %v1632_v2 }
 0x363   : > { %v2175_v24 = vpop.eup %2174  ;;  %v1813_v30 = vadd.f32 %v3064_v17, %v1777_v4  ;;  %v1392_v48 = vadd.f32 1e-05, %v1360_v32 }
 0x364   : > { %v1634_v57 = vmul.f32 %v2173_v55, %v1633_v45  ;;  %v1640_v1 = vmul.f32 %v2175_v24, %v1391_v27  ;;  %vm1646_vm9 = vweird.f32 %v2175_v24 }
 0x365   : > { %v1845_v40 = vmax.f32 %v1813_v30, 0.0  ;;  %2176 = vrsqrt.f32 %v1392_v48  ;;  %vm1647_vm11 = vmor %vm1645_vm10, %vm1646_vm9  ;;  %vm1655_vm13 = vweird.f32 %v1392_v48 }
 0x366   : > { %v1638_v9 = vsel %vm1637_vm8, %v2173_v55, %v1634_v57  ;;  %v1641_v43 = vmul.f32 %v2175_v24, %v1640_v1 }
 0x367   : > { %1877 = vst [vmem:[%s2888_s11 + $0xb0] sm:$0xff] %v1845_v40  ;;  %v1742_v63 = vmul.f32 %v1638_v9, %v2939_v61 }
 0x368   : > { %v1642_v49 = vmul.f32 0.5, %v1641_v43  ;;  %v1324_v14 = vpop.xlane.xlu1 %1323 }
 0x369   : > { %v1778_v41 = vmul.f32 %v3058_v5, %v1742_v63  ;;  %v1361_v15 = vmul.f32 0.03125, %v1324_v14 }
 0x36a   : > { %v1643_v44 = vsub.f32 1.5, %v1642_v49 }
 0x36b   : > { %v2177_v6 = vpop.eup %2176  ;;  %v1814_v51 = vadd.f32 %v3064_v17, %v1778_v41  ;;  %v1393_v50 = vadd.f32 1e-05, %v1361_v15 }
 0x36c   : > { %v1644_v33 = vmul.f32 %v2175_v24, %v1643_v44  ;;  %v1650_v25 = vmul.f32 %v2177_v6, %v1392_v48  ;;  %vm1656_vm12 = vweird.f32 %v2177_v6 }
 0x36d   : > { %v1846_v26 = vmax.f32 %v1814_v51, 0.0  ;;  %2178 = vrsqrt.f32 %v1393_v50  ;;  %vm1657_vm14 = vmor %vm1655_vm13, %vm1656_vm12  ;;  %vm1665_vm0 = vweird.f32 %v1393_v50 }
 0x36e   : > { %v1648_v42 = vsel %vm1647_vm11, %v2175_v24, %v1644_v33  ;;  %v1651_v61 = vmul.f32 %v2177_v6, %v1650_v25 }
 0x36f   : > { %1878 = vst [vmem:[%s2888_s11 + $0xb8] sm:$0xff] %v1846_v26  ;;  %v1743_v21 = vmul.f32 %v1648_v42, %v2949_v31 }
 0x370   : > { %v1652_v7 = vmul.f32 0.5, %v1651_v61  ;;  %v1326_v59 = vpop.xlane.xlu2 %1325 }
 0x371   : > { %v1779_v22 = vmul.f32 %v3058_v5, %v1743_v21  ;;  %v1362_v16 = vmul.f32 0.03125, %v1326_v59 }
 0x372   : > { %v1653_v8 = vsub.f32 1.5, %v1652_v7 }
 0x373   : > { %v2179_v0 = vpop.eup %2178  ;;  %v1815_v13 = vadd.f32 %v3064_v17, %v1779_v22  ;;  %v1394_v18 = vadd.f32 1e-05, %v1362_v16 }
 0x374   : > { %v1654_v47 = vmul.f32 %v2177_v6, %v1653_v8  ;;  %v1660_v37 = vmul.f32 %v2179_v0, %v1393_v50  ;;  %vm1666_vm15 = vweird.f32 %v2179_v0 }
 0x375   : > { %v1847_v19 = vmax.f32 %v1815_v13, 0.0  ;;  %2180 = vrsqrt.f32 %v1394_v18  ;;  %vm1667_vm1 = vmor %vm1665_vm0, %vm1666_vm15  ;;  %vm1675_vm3 = vweird.f32 %v1394_v18 }
 0x376   : > { %v1658_v3 = vsel %vm1657_vm14, %v2177_v6, %v1654_v47  ;;  %v1661_v31 = vmul.f32 %v2179_v0, %v1660_v37 }
 0x377   : > { %1879 = vst [vmem:[%s2888_s11 + $0xc0] sm:$0xff] %v1847_v19  ;;  %v1744_v11 = vmul.f32 %v1658_v3, %v2958_v60 }
 0x378   : > { %v1662_v39 = vmul.f32 0.5, %v1661_v31  ;;  %v1328_v38 = vpop.xlane.xlu0 %1327 }
 0x379   : > { %v1780_v52 = vmul.f32 %v3058_v5, %v1744_v11  ;;  %v1363_v12 = vmul.f32 0.03125, %v1328_v38 }
 0x37a   : > { %v1663_v46 = vsub.f32 1.5, %v1662_v39 }
 0x37b   : > { %v2181_v56 = vpop.eup %2180  ;;  %v1816_v55 = vadd.f32 %v3064_v17, %v1780_v52  ;;  %v1395_v27 = vadd.f32 1e-05, %v1363_v12 }
 0x37c   : > { %v1664_v10 = vmul.f32 %v2179_v0, %v1663_v46  ;;  %v1670_v35 = vmul.f32 %v2181_v56, %v1394_v18  ;;  %vm1676_vm2 = vweird.f32 %v2181_v56 }
 0x37d   : > { %v1848_v23 = vmax.f32 %v1816_v55, 0.0  ;;  %2182 = vrsqrt.f32 %v1395_v27  ;;  %vm1677_vm4 = vmor %vm1675_vm3, %vm1676_vm2  ;;  %vm1685_vm6 = vweird.f32 %v1395_v27 }
 0x37e   : > { %v1668_v62 = vsel %vm1667_vm1, %v2179_v0, %v1664_v10  ;;  %v1671_v60 = vmul.f32 %v2181_v56, %v1670_v35 }
 0x37f   : > { %1880 = vst [vmem:[%s2888_s11 + $0xc8] sm:$0xff] %v1848_v23  ;;  %v1745_v36 = vmul.f32 %v1668_v62, %v2967_v20 }
 0x380   : > { %v1672_v2 = vmul.f32 0.5, %v1671_v60  ;;  %v1330_v34 = vpop.xlane.xlu1 %1329 }
 0x381   : > { %v1781_v4 = vmul.f32 %v3058_v5, %v1745_v36  ;;  %v1364_v32 = vmul.f32 0.03125, %v1330_v34 }
 0x382   : > { %v1673_v45 = vsub.f32 1.5, %v1672_v2 }
 0x383   : > { %v2183_v24 = vpop.eup %2182  ;;  %v1817_v30 = vadd.f32 %v3064_v17, %v1781_v4  ;;  %v1396_v48 = vadd.f32 1e-05, %v1364_v32 }
 0x384   : > { %v1674_v57 = vmul.f32 %v2181_v56, %v1673_v45  ;;  %v1680_v1 = vmul.f32 %v2183_v24, %v1395_v27  ;;  %vm1686_vm5 = vweird.f32 %v2183_v24 }
 0x385   : > { %v1849_v40 = vmax.f32 %v1817_v30, 0.0  ;;  %2184 = vrsqrt.f32 %v1396_v48  ;;  %vm1687_vm7 = vmor %vm1685_vm6, %vm1686_vm5  ;;  %vm1695_vm9 = vweird.f32 %v1396_v48 }
 0x386   : > { %v1678_v9 = vsel %vm1677_vm4, %v2181_v56, %v1674_v57  ;;  %v1681_v20 = vmul.f32 %v2183_v24, %v1680_v1 }
 0x387   : > { %1881 = vst [vmem:[%s2888_s11 + $0xd0] sm:$0xff] %v1849_v40  ;;  %v1746_v43 = vmul.f32 %v1678_v9, %v2977_v28 }
 0x388   : > { %v1682_v63 = vmul.f32 0.5, %v1681_v20  ;;  %v1332_v49 = vpop.xlane.xlu2 %1331 }
 0x389   : > { %v1782_v14 = vmul.f32 %v3058_v5, %v1746_v43  ;;  %v1365_v41 = vmul.f32 0.03125, %v1332_v49 }
 0x38a   : > { %v1683_v15 = vsub.f32 1.5, %v1682_v63 }
 0x38b   : > { %v2185_v44 = vpop.eup %2184  ;;  %v1818_v6 = vadd.f32 %v3064_v17, %v1782_v14  ;;  %v1397_v51 = vadd.f32 1e-05, %v1365_v41 }
 0x38c   : > { %v1684_v50 = vmul.f32 %v2183_v24, %v1683_v15  ;;  %v1690_v33 = vmul.f32 %v2185_v44, %v1396_v48  ;;  %vm1696_vm8 = vweird.f32 %v2185_v44 }
 0x38d   : > { %v1850_v25 = vmax.f32 %v1818_v6, 0.0  ;;  %2186 = vrsqrt.f32 %v1397_v51  ;;  %vm1697_vm10 = vmor %vm1695_vm9, %vm1696_vm8  ;;  %vm1705_vm12 = vweird.f32 %v1397_v51 }
 0x38e   : > { %v1688_v26 = vsel %vm1687_vm7, %v2183_v24, %v1684_v50  ;;  %v1691_v28 = vmul.f32 %v2185_v44, %v1690_v33 }
 0x38f   : > { %1882 = vst [vmem:[%s2888_s11 + $0xd8] sm:$0xff] %v1850_v25  ;;  %v1747_v42 = vmul.f32 %v1688_v26, %v2987_v54 }
 0x390   : > { %v1692_v61 = vmul.f32 0.5, %v1691_v28  ;;  %v1334_v21 = vpop.xlane.xlu0 %1333 }
 0x391   : > { %v1783_v7 = vmul.f32 %v3058_v5, %v1747_v42  ;;  %v1366_v59 = vmul.f32 0.03125, %v1334_v21 }
 0x392   : > { %v1693_v22 = vsub.f32 1.5, %v1692_v61 }
 0x393   : > { %v2187_v16 = vpop.eup %2186  ;;  %v1819_v8 = vadd.f32 %v3064_v17, %v1783_v7  ;;  %v1398_v0 = vadd.f32 1e-05, %v1366_v59 }
 0x394   : > { %v1694_v13 = vmul.f32 %v2185_v44, %v1693_v22  ;;  %v1700_v18 = vmul.f32 %v2187_v16, %v1397_v51  ;;  %vm1706_vm11 = vweird.f32 %v2187_v16 }
 0x395   : > { %v1851_v47 = vmax.f32 %v1819_v8, 0.0  ;;  %2188 = vrsqrt.f32 %v1398_v0  ;;  %vm1707_vm13 = vmor %vm1705_vm12, %vm1706_vm11  ;;  %vm1715_vm15 = vweird.f32 %v1398_v0 }
 0x396   : > { %v1698_v37 = vsel %vm1697_vm10, %v2185_v44, %v1694_v13  ;;  %v1701_v54 = vmul.f32 %v2187_v16, %v1700_v18 }
 0x397   : > { %1883 = vst [vmem:[%s2888_s11 + $0xe0] sm:$0xff] %v1851_v47  ;;  %v1748_v19 = vmul.f32 %v1698_v37, %v2997_v58 }
 0x398   : > { %v1702_v3 = vmul.f32 0.5, %v1701_v54 }
 0x399   : > { %v1784_v31 = vmul.f32 %v3058_v5, %v1748_v19 }
 0x39a   : > { %v1703_v11 = vsub.f32 1.5, %v1702_v3 }
 0x39b   : > { %v2189_v39 = vpop.eup %2188  ;;  %v1820_v38 = vadd.f32 %v3064_v17, %v1784_v31 }
 0x39c   : > { %v1704_v52 = vmul.f32 %v2187_v16, %v1703_v11  ;;  %v1710_v12 = vmul.f32 %v2189_v39, %v1398_v0  ;;  %vm1716_vm14 = vweird.f32 %v2189_v39 }
 0x39d   : > { %v1852_v46 = vmax.f32 %v1820_v38, 0.0  ;;  %vm1717_vm0 = vmor %vm1715_vm15, %vm1716_vm14 }
 0x39e   : > { %v1708_v56 = vsel %vm1707_vm13, %v2187_v16, %v1704_v52  ;;  %v1711_v55 = vmul.f32 %v2189_v39, %v1710_v12 }
 0x39f   : > { %1884 = vst [vmem:[%s2888_s11 + $0xe8] sm:$0xff] %v1852_v46  ;;  %v1749_v58 = vmul.f32 %v1708_v56, %v3007_v53 }
 0x3a0   : > { %v1712_v27 = vmul.f32 0.5, %v1711_v55 }
 0x3a1   : > { %v1785_v10 = vmul.f32 %v3058_v5, %v1749_v58 }
 0x3a2   : > { %v1713_v35 = vsub.f32 1.5, %v1712_v27 }
 0x3a3   : > { %v1821_v23 = vadd.f32 %v3064_v17, %v1785_v10 }
 0x3a4   : > { %v1714_v62 = vmul.f32 %v2189_v39, %v1713_v35 }
 0x3a5   : > { %v1853_v60 = vmax.f32 %v1821_v23, 0.0 }
 0x3a6   : > { %v1718_v36 = vsel %vm1717_vm0, %v2189_v39, %v1714_v62 }
 0x3a7   : > { %1885 = vst [vmem:[%s2888_s11 + $0xf0] sm:$0xff] %v1853_v60  ;;  %v1750_v53 = vmul.f32 %v1718_v36, %v3017_v29 }
 0x3a9   : > { %v1786_v2 = vmul.f32 %v3058_v5, %v1750_v53 }
 0x3ab   : > { %v1822_v34 = vadd.f32 %v3064_v17, %v1786_v2 }
 0x3ad   : > { %v1854_v4 = vmax.f32 %v1822_v34, 0.0 }
 0x3af   : > { %1886 = vst [vmem:[%s2888_s11 + $0xf8] sm:$0xff] %v1854_v4 }
 0x3b0   : > { %2219 = shalt.err (!%p2216_p3)
}
 0x3b1   : > { %s2256_s25 = smov 128   ;;  %s2257_s11 = smov 8  }
 0x3b2   : > { %2080 = dma.vmem_to_hbm [thread:$0]  (%p2351_p5), %s1901_s30, 4096, %s1903_s12, %s1888_s17, %s2256_s25, %s2256_s25, %s2257_s11  }
 0x3b3 PF: > { %p2086_p4 = scmp.ge.s32.totalorder %s2254_s16, 2  ;;  %s1917_s20 = sand.u32 1, %s2242_s13  }
 0x3b4   : > { %s1918_s26 = scalar_lea.sflag [#allocation3], %s1917_s20 }
 0x3b5   : > { %p2083_p7 = pnand %p2086_p4, %p2355_p6 }
 0x3b7   : > { %p2084_p8 = pneg %p2083_p7 }
 0x3b9   : > { %2237 = dma.done.wait (%p2084_p8), %s1918_s26, 4096  }
 0x3ba   : > { %2239 = vsyncadd (%p2084_p8), %s1918_s26, 4294963200  ;;  %p20_p9 = scmp.ge.s32.totalorder %s2338_s19, 4   ;;  %s3151_s13 = smov %s2246_s14 }
 0x3bb   : > { %s3152_s14 = smov %s2250_s15  ;;  %s3153_s15 = smov %s2349_s22 }
 0x3bc   : > { %s3154_s16 = smov %s2338_s19  ;;  %22 = sbr.rel (!%p20_p9) target bundleno = 3 (0x3), region = 98 }
 0x3c1   :  { %1924 = vsyncpa [#allocation3], 1 }
 0x3c2   :  { %1926 = vsyncpa [#allocation3 + $0x1], 1 }

</bundles_post_ra>
